<compile_context>
chip_gen: v7x
topology: tpu7x:2x2x1
jax: 0.10.0
libtpu: 0.0.40
codegen_flags: <defaults>
</compile_context>

<pallas_src>
import functools

import jax
import jax.numpy as jnp
from jax.experimental import pallas as pl
from jax.experimental.pallas import tpu as pltpu


def _double_conv_kernel(x_ref, w1_ref, b1_ref, w2_ref, b2_ref,
                        ml_ref, mr_ref, mv_ref, o_ref,
                        xflat_ref, midflat_ref, *,
                        H, W, base, stride, nspan, L, bblk):
    # x_ref      : (Bblk, Cin, H*W)  bf16   flattened NCHW input block
    # w1_ref     : (Cmid, 9*Cin)     bf16   [co, (ky*3+kx)*Cin + ci]
    # b1_ref     : (Cmid, 1)         f32
    # w2_ref     : (Cout, 9*Cmid)    bf16
    # b2_ref     : (Cout, 1)         f32
    # ml_ref     : (1, L)            bf16   0 where source column == W-1 (for kx==0 taps)
    # mr_ref     : (1, L)            bf16   0 where source column == 0   (for kx==2 taps)
    # mv_ref     : (1, nspan)        f32    1 at valid output positions, 0 at gaps
    # o_ref      : (Bblk, Cout, H*W) f32    lane-dense output block
    # xflat_ref  : (Cin,  L)         bf16   zero-gapped flat input scratch
    # midflat_ref: (Cmid, L)         bf16   zero-gapped flat mid-activation scratch
    HW = H * W
    Cin = xflat_ref.shape[0]
    Cmid = midflat_ref.shape[0]
    gap = stride - HW

    # ---- refresh halo / gap strips & fill the valid segments (all aligned stores) ----
    xflat_ref[:, 0:base] = jnp.zeros((Cin, base), xflat_ref.dtype)
    for j in range(bblk):
        s = base + j * stride
        xflat_ref[:, s:s + HW] = x_ref[j]
        xflat_ref[:, s + HW:s + stride] = jnp.zeros((Cin, gap), xflat_ref.dtype)
    midflat_ref[:, 0:base] = jnp.zeros((Cmid, base), midflat_ref.dtype)
    midflat_ref[:, base + nspan:L] = jnp.zeros((Cmid, L - base - nspan),
                                               midflat_ref.dtype)

    ml = ml_ref[...]      # (1, L) bf16
    mr = mr_ref[...]      # (1, L) bf16
    mv = mv_ref[...]      # (1, nspan) f32

    def conv3x3_relu(src_ref, wt_ref, b_ref):
        src = src_ref[...]                    # (C, L) bf16, one aligned full load
        src_l = src * ml                      # pre-masked copy used by all kx == 0 taps
        src_r = src * mr                      # pre-masked copy used by all kx == 2 taps
        s0 = base - W - 1
        taps = []
        for ky in range(3):
            for kx in range(3):
                v = src_l if kx == 0 else (src_r if kx == 2 else src)
                s = s0 + ky * W + kx
                taps.append(v[:, s:s + nspan])            # lane-shift of a loaded value
        patch = jnp.concatenate(taps, axis=0)             # (9*C, nspan) bf16
        acc = jnp.dot(wt_ref[...], patch,
                      preferred_element_type=jnp.float32)  # single MXU dot per conv
        return jnp.maximum(acc + b_ref[...], 0.0)           # (Cx, nspan) f32

    # ---- conv1 + ReLU -> zero gap columns -> store into the mid scratch (aligned) ----
    mid = conv3x3_relu(xflat_ref, w1_ref, b1_ref) * mv
    midflat_ref[:, base:base + nspan] = mid.astype(midflat_ref.dtype)

    # ---- conv2 + ReLU -> lane-dense per-image stores (128-aligned offsets) ----
    out = conv3x3_relu(midflat_ref, w2_ref, b2_ref)        # (Cout, nspan) f32
    for j in range(bblk):
        o_ref[j] = out[:, j * stride:j * stride + HW].astype(o_ref.dtype)


def double_conv(x_nchw, w1, b1, w2, b2, *, bblk=None):
    """x_nchw: (B, Cin, H, W); w1: (3,3,Cin,Cmid); w2: (3,3,Cmid,Cout) [HWIO layout]."""
    B, Cin, H, W = x_nchw.shape
    Cmid = w1.shape[3]
    Cout = w2.shape[3]
    HW = H * W

    if bblk is None:
        bblk = B                    # small batches: whole batch in one grid step
    assert B % bblk == 0, (B, bblk)

    # Lane-tile aligned halo in front of the first image and gap between images; the
    # gap (>= W+1) provides the implicit vertical zero padding between flattened images.
    base = -(-(W + 1) // 128) * 128
    gapw = -(-(W + 1) // 128) * 128
    stride = HW + gapw                            # per-image segment length
    nspan = (bblk - 1) * stride + HW              # dot N dimension (last gap excluded)
    L = base + nspan + gapw                       # flat scratch length

    # Masks, precomputed once (not rebuilt per grid step).
    pos = jnp.arange(L)
    rel = pos - base
    p = rel % stride
    valid_full = (rel >= 0) & (p < HW)
    col = p % W
    ml = jnp.where(valid_full & (col == W - 1), 0.0, 1.0).astype(jnp.bfloat16)[None, :]
    mr = jnp.where(valid_full & (col == 0), 0.0, 1.0).astype(jnp.bfloat16)[None, :]
    q = jnp.arange(nspan)
    mv = ((q % stride) < HW).astype(jnp.float32)[None, :]

    # Free, layout-preserving reshapes; input cast to bf16 in the wrapper (halves DMA).
    x_flat = x_nchw.astype(jnp.bfloat16).reshape(B, Cin, HW)
    w1t = jnp.transpose(w1, (3, 0, 1, 2)).reshape(Cmid, 9 * Cin).astype(jnp.bfloat16)
    w2t = jnp.transpose(w2, (3, 0, 1, 2)).reshape(Cout, 9 * Cmid).astype(jnp.bfloat16)
    b1c = b1.reshape(Cmid, 1).astype(jnp.float32)
    b2c = b2.reshape(Cout, 1).astype(jnp.float32)

    kernel = functools.partial(_double_conv_kernel, H=H, W=W, base=base, stride=stride,
                               nspan=nspan, L=L, bblk=bblk)

    out_flat = pl.pallas_call(
        kernel,
        out_shape=jax.ShapeDtypeStruct((B, Cout, HW), jnp.float32),
        grid_spec=pltpu.PrefetchScalarGridSpec(
            num_scalar_prefetch=0,
            grid=(B // bblk,),
            in_specs=[
                pl.BlockSpec((bblk, Cin, HW), lambda g: (g, 0, 0)),
                pl.BlockSpec((Cmid, 9 * Cin), lambda g: (0, 0)),
                pl.BlockSpec((Cmid, 1), lambda g: (0, 0)),
                pl.BlockSpec((Cout, 9 * Cmid), lambda g: (0, 0)),
                pl.BlockSpec((Cout, 1), lambda g: (0, 0)),
                pl.BlockSpec((1, L), lambda g: (0, 0)),
                pl.BlockSpec((1, L), lambda g: (0, 0)),
                pl.BlockSpec((1, nspan), lambda g: (0, 0)),
            ],
            out_specs=pl.BlockSpec((bblk, Cout, HW), lambda g: (g, 0, 0)),
            scratch_shapes=[
                pltpu.VMEM((Cin, L), jnp.bfloat16),
                pltpu.VMEM((Cmid, L), jnp.bfloat16),
            ],
        ),
        compiler_params=pltpu.CompilerParams(
            dimension_semantics=("parallel",),
        ),
    )(x_flat, w1t, b1c, w2t, b2c, ml, mr, mv)

    # Free reshape back to PyTorch's NCHW convention.
    return out_flat.reshape(B, Cout, H, W)


def _reference(x_nchw, w1, b1, w2, b2):
    """Pure-JAX reference mirroring the kernel's bf16 input/weight/mid precision."""
    f32 = jnp.float32
    xb = x_nchw.astype(jnp.bfloat16).astype(f32)
    w1b = w1.astype(jnp.bfloat16).astype(f32)
    w2b = w2.astype(jnp.bfloat16).astype(f32)

    xh = jnp.transpose(xb, (0, 2, 3, 1))
    dn1 = jax.lax.conv_dimension_numbers(xh.shape, w1b.shape, ("NHWC", "HWIO", "NHWC"))
    y = jax.lax.conv_general_dilated(xh, w1b, (1, 1), "SAME", dimension_numbers=dn1,
                                     precision=jax.lax.Precision.HIGHEST)
    y = jnp.maximum(y + b1[None, None, None, :], 0.0)
    y = y.astype(jnp.bfloat16).astype(f32)   # kernel stores mid as bf16

    dn2 = jax.lax.conv_dimension_numbers(y.shape, w2b.shape, ("NHWC", "HWIO", "NHWC"))
    z = jax.lax.conv_general_dilated(y, w2b, (1, 1), "SAME", dimension_numbers=dn2,
                                     precision=jax.lax.Precision.HIGHEST)
    z = jnp.maximum(z + b2[None, None, None, :], 0.0)
    return jnp.transpose(z, (0, 3, 1, 2))


if __name__ == "__main__":
    B, Cin, Cout, H, W = 2, 4, 8, 16, 16  # DoubleConv(in_channels=4, out_channels=8)

    key = jax.random.PRNGKey(0)
    kx, kw1, kb1, kw2, kb2 = jax.random.split(key, 5)

    x = jax.random.normal(kx, (B, Cin, H, W), dtype=jnp.float32)
    # weights in HWIO layout (3,3,in,out); PyTorch's OIHW is just a transpose of this
    w1 = 0.1 * jax.random.normal(kw1, (3, 3, Cin, Cout), dtype=jnp.float32)
    b1 = 0.1 * jax.random.normal(kb1, (Cout,), dtype=jnp.float32)
    w2 = 0.1 * jax.random.normal(kw2, (3, 3, Cout, Cout), dtype=jnp.float32)
    b2 = 0.1 * jax.random.normal(kb2, (Cout,), dtype=jnp.float32)

    out = double_conv(x, w1, b1, w2, b2)
    out = jax.block_until_ready(out)

    ref = jax.block_until_ready(_reference(x, w1, b1, w2, b2))
    assert out.shape == (B, Cout, H, W), out.shape
    assert jnp.allclose(out, ref, atol=2e-2, rtol=2e-2), "mismatch vs reference"

    print("KERNEL_OK")
</pallas_src>

<mosaic_0001>
module attributes {stable_mosaic.version = 11 : i64} {
  func.func @_double_conv_kernel(%arg0: i32, %arg1: memref<2x4x256xbf16, #tpu.memory_space<vmem>>, %arg2: memref<8x36xbf16, #tpu.memory_space<vmem>>, %arg3: memref<8x1xf32, #tpu.memory_space<vmem>>, %arg4: memref<8x72xbf16, #tpu.memory_space<vmem>>, %arg5: memref<8x1xf32, #tpu.memory_space<vmem>>, %arg6: memref<1x896xbf16, #tpu.memory_space<vmem>>, %arg7: memref<1x896xbf16, #tpu.memory_space<vmem>>, %arg8: memref<1x640xf32, #tpu.memory_space<vmem>>, %arg9: memref<2x8x256xf32, #tpu.memory_space<vmem>>, %arg10: memref<4x896xbf16, #tpu.memory_space<vmem>>, %arg11: memref<8x896xbf16, #tpu.memory_space<vmem>>) attributes {dimension_semantics = [#tpu.dimension_semantics<parallel>], iteration_bounds = array<i64: 1>, scalar_prefetch = 0 : i64, scratch_operands = 2 : i64, tpu.core_type = #tpu.core_type<tc>, window_params = [{transform_indices = @transform_0, window_bounds = array<i64: 2, 4, 256>}, {pipeline_mode = #tpu.pipeline_mode<synchronous>, transform_indices = @transform_1, window_bounds = array<i64: 8, 36>}, {pipeline_mode = #tpu.pipeline_mode<synchronous>, transform_indices = @transform_2, window_bounds = array<i64: 8, 1>}, {pipeline_mode = #tpu.pipeline_mode<synchronous>, transform_indices = @transform_3, window_bounds = array<i64: 8, 72>}, {pipeline_mode = #tpu.pipeline_mode<synchronous>, transform_indices = @transform_4, window_bounds = array<i64: 8, 1>}, {pipeline_mode = #tpu.pipeline_mode<synchronous>, transform_indices = @transform_5, window_bounds = array<i64: 1, 896>}, {pipeline_mode = #tpu.pipeline_mode<synchronous>, transform_indices = @transform_6, window_bounds = array<i64: 1, 896>}, {pipeline_mode = #tpu.pipeline_mode<synchronous>, transform_indices = @transform_7, window_bounds = array<i64: 1, 640>}, {transform_indices = @transform_8, window_bounds = array<i64: 2, 8, 256>}]} {
    %cst = arith.constant 0.000000e+00 : bf16
    %0 = vector.broadcast %cst : bf16 to vector<4x128xbf16>
    %c0 = arith.constant 0 : index
    %c0_0 = arith.constant 0 : index
    %1 = vector.load %arg10[%c0, %c0_0] : memref<4x896xbf16, #tpu.memory_space<vmem>>, vector<4x128xbf16>
    tpu.vector_store %arg10[%c0, %c0_0], %0 {strides = array<i32>} : memref<4x896xbf16, #tpu.memory_space<vmem>>, vector<4x128xbf16>,
    %c0_1 = arith.constant 0 : index
    %c0_2 = arith.constant 0 : index
    %c0_3 = arith.constant 0 : index
    %2 = vector.load %arg1[%c0_1, %c0_2, %c0_3] : memref<2x4x256xbf16, #tpu.memory_space<vmem>>, vector<1x4x256xbf16>
    %3 = vector.shape_cast %2 : vector<1x4x256xbf16> to vector<4x256xbf16>
    %c0_4 = arith.constant 0 : index
    %c128 = arith.constant 128 : index
    %4 = vector.load %arg10[%c0_4, %c128] : memref<4x896xbf16, #tpu.memory_space<vmem>>, vector<4x256xbf16>
    tpu.vector_store %arg10[%c0_4, %c128], %3 {strides = array<i32>} : memref<4x896xbf16, #tpu.memory_space<vmem>>, vector<4x256xbf16>,
    %cst_5 = arith.constant 0.000000e+00 : bf16
    %5 = vector.broadcast %cst_5 : bf16 to vector<4x128xbf16>
    %c0_6 = arith.constant 0 : index
    %c384 = arith.constant 384 : index
    %6 = vector.load %arg10[%c0_6, %c384] : memref<4x896xbf16, #tpu.memory_space<vmem>>, vector<4x128xbf16>
    tpu.vector_store %arg10[%c0_6, %c384], %5 {strides = array<i32>} : memref<4x896xbf16, #tpu.memory_space<vmem>>, vector<4x128xbf16>,
    %c1 = arith.constant 1 : index
    %c0_7 = arith.constant 0 : index
    %c0_8 = arith.constant 0 : index
    %7 = vector.load %arg1[%c1, %c0_7, %c0_8] : memref<2x4x256xbf16, #tpu.memory_space<vmem>>, vector<1x4x256xbf16>
    %8 = vector.shape_cast %7 : vector<1x4x256xbf16> to vector<4x256xbf16>
    %c0_9 = arith.constant 0 : index
    %c512 = arith.constant 512 : index
    %9 = vector.load %arg10[%c0_9, %c512] : memref<4x896xbf16, #tpu.memory_space<vmem>>, vector<4x256xbf16>
    tpu.vector_store %arg10[%c0_9, %c512], %8 {strides = array<i32>} : memref<4x896xbf16, #tpu.memory_space<vmem>>, vector<4x256xbf16>,
    %cst_10 = arith.constant 0.000000e+00 : bf16
    %10 = vector.broadcast %cst_10 : bf16 to vector<4x128xbf16>
    %c0_11 = arith.constant 0 : index
    %c768 = arith.constant 768 : index
    %11 = vector.load %arg10[%c0_11, %c768] : memref<4x896xbf16, #tpu.memory_space<vmem>>, vector<4x128xbf16>
    tpu.vector_store %arg10[%c0_11, %c768], %10 {strides = array<i32>} : memref<4x896xbf16, #tpu.memory_space<vmem>>, vector<4x128xbf16>,
    %cst_12 = arith.constant 0.000000e+00 : bf16
    %12 = vector.broadcast %cst_12 : bf16 to vector<8x128xbf16>
    %c0_13 = arith.constant 0 : index
    %c0_14 = arith.constant 0 : index
    %13 = vector.load %arg11[%c0_13, %c0_14] : memref<8x896xbf16, #tpu.memory_space<vmem>>, vector<8x128xbf16>
    tpu.vector_store %arg11[%c0_13, %c0_14], %12 {strides = array<i32>} : memref<8x896xbf16, #tpu.memory_space<vmem>>, vector<8x128xbf16>,
    %cst_15 = arith.constant 0.000000e+00 : bf16
    %14 = vector.broadcast %cst_15 : bf16 to vector<8x128xbf16>
    %c0_16 = arith.constant 0 : index
    %c768_17 = arith.constant 768 : index
    %15 = vector.load %arg11[%c0_16, %c768_17] : memref<8x896xbf16, #tpu.memory_space<vmem>>, vector<8x128xbf16>
    tpu.vector_store %arg11[%c0_16, %c768_17], %14 {strides = array<i32>} : memref<8x896xbf16, #tpu.memory_space<vmem>>, vector<8x128xbf16>,
    %c0_18 = arith.constant 0 : index
    %c0_19 = arith.constant 0 : index
    %16 = vector.load %arg6[%c0_18, %c0_19] : memref<1x896xbf16, #tpu.memory_space<vmem>>, vector<1x896xbf16>
    %c0_20 = arith.constant 0 : index
    %c0_21 = arith.constant 0 : index
    %17 = vector.load %arg7[%c0_20, %c0_21] : memref<1x896xbf16, #tpu.memory_space<vmem>>, vector<1x896xbf16>
    %c0_22 = arith.constant 0 : index
    %c0_23 = arith.constant 0 : index
    %18 = vector.load %arg8[%c0_22, %c0_23] : memref<1x640xf32, #tpu.memory_space<vmem>>, vector<1x640xf32>
    %c0_24 = arith.constant 0 : index
    %c0_25 = arith.constant 0 : index
    %19 = vector.load %arg10[%c0_24, %c0_25] : memref<4x896xbf16, #tpu.memory_space<vmem>>, vector<4x896xbf16>
    %20 = vector.broadcast %16 : vector<1x896xbf16> to vector<4x896xbf16>
    %21 = arith.mulf %19, %20 : vector<4x896xbf16>
    %22 = vector.broadcast %17 : vector<1x896xbf16> to vector<4x896xbf16>
    %23 = arith.mulf %19, %22 : vector<4x896xbf16>
    %24 = vector.extract_strided_slice %21 {offsets = [0, 111], sizes = [4, 640], strides = [1, 1]} : vector<4x896xbf16> to vector<4x640xbf16>
    %25 = vector.extract_strided_slice %19 {offsets = [0, 112], sizes = [4, 640], strides = [1, 1]} : vector<4x896xbf16> to vector<4x640xbf16>
    %26 = vector.extract_strided_slice %23 {offsets = [0, 113], sizes = [4, 640], strides = [1, 1]} : vector<4x896xbf16> to vector<4x640xbf16>
    %27 = vector.extract_strided_slice %21 {offsets = [0, 127], sizes = [4, 640], strides = [1, 1]} : vector<4x896xbf16> to vector<4x640xbf16>
    %28 = vector.extract_strided_slice %19 {offsets = [0, 128], sizes = [4, 640], strides = [1, 1]} : vector<4x896xbf16> to vector<4x640xbf16>
    %29 = vector.extract_strided_slice %23 {offsets = [0, 129], sizes = [4, 640], strides = [1, 1]} : vector<4x896xbf16> to vector<4x640xbf16>
    %30 = vector.extract_strided_slice %21 {offsets = [0, 143], sizes = [4, 640], strides = [1, 1]} : vector<4x896xbf16> to vector<4x640xbf16>
    %31 = vector.extract_strided_slice %19 {offsets = [0, 144], sizes = [4, 640], strides = [1, 1]} : vector<4x896xbf16> to vector<4x640xbf16>
    %32 = vector.extract_strided_slice %23 {offsets = [0, 145], sizes = [4, 640], strides = [1, 1]} : vector<4x896xbf16> to vector<4x640xbf16>
    %33 = tpu.concatenate %24, %25, %26, %27, %28, %29, %30, %31, %32 in 0 : vector<4x640xbf16>, vector<4x640xbf16>, vector<4x640xbf16>, vector<4x640xbf16>, vector<4x640xbf16>, vector<4x640xbf16>, vector<4x640xbf16>, vector<4x640xbf16>, vector<4x640xbf16> -> vector<36x640xbf16>
    %c0_26 = arith.constant 0 : index
    %c0_27 = arith.constant 0 : index
    %34 = vector.load %arg2[%c0_26, %c0_27] : memref<8x36xbf16, #tpu.memory_space<vmem>>, vector<8x36xbf16>
    %cst_28 = arith.constant dense<0.000000e+00> : vector<8x640xf32>
    %35 = tpu.matmul %34, %33, %cst_28 {dimension_numbers = #tpu.dot_dimension_numbers<[1], [0], [0], [1], [0, 0, 1, 1], [], []>} : vector<8x36xbf16>, vector<36x640xbf16>, vector<8x640xf32> -> vector<8x640xf32>
    %c0_29 = arith.constant 0 : index
    %c0_30 = arith.constant 0 : index
    %36 = vector.load %arg3[%c0_29, %c0_30] : memref<8x1xf32, #tpu.memory_space<vmem>>, vector<8x1xf32>
    %37 = vector.broadcast %36 : vector<8x1xf32> to vector<8x640xf32>
    %38 = arith.addf %35, %37 : vector<8x640xf32>
    %cst_31 = arith.constant 0.000000e+00 : f32
    %39 = vector.broadcast %cst_31 : f32 to vector<8x640xf32>
    %40 = arith.maximumf %38, %39 : vector<8x640xf32>
    %41 = vector.broadcast %18 : vector<1x640xf32> to vector<8x640xf32>
    %42 = arith.mulf %40, %41 : vector<8x640xf32>
    %43 = arith.truncf %42 : vector<8x640xf32> to vector<8x640xbf16>
    %c0_32 = arith.constant 0 : index
    %c128_33 = arith.constant 128 : index
    %44 = vector.load %arg11[%c0_32, %c128_33] : memref<8x896xbf16, #tpu.memory_space<vmem>>, vector<8x640xbf16>
    tpu.vector_store %arg11[%c0_32, %c128_33], %43 {strides = array<i32>} : memref<8x896xbf16, #tpu.memory_space<vmem>>, vector<8x640xbf16>,
    %c0_34 = arith.constant 0 : index
    %c0_35 = arith.constant 0 : index
    %45 = vector.load %arg11[%c0_34, %c0_35] : memref<8x896xbf16, #tpu.memory_space<vmem>>, vector<8x896xbf16>
    %46 = vector.broadcast %16 : vector<1x896xbf16> to vector<8x896xbf16>
    %47 = arith.mulf %45, %46 : vector<8x896xbf16>
    %48 = vector.broadcast %17 : vector<1x896xbf16> to vector<8x896xbf16>
    %49 = arith.mulf %45, %48 : vector<8x896xbf16>
    %50 = vector.extract_strided_slice %47 {offsets = [0, 111], sizes = [8, 640], strides = [1, 1]} : vector<8x896xbf16> to vector<8x640xbf16>
    %51 = vector.extract_strided_slice %45 {offsets = [0, 112], sizes = [8, 640], strides = [1, 1]} : vector<8x896xbf16> to vector<8x640xbf16>
    %52 = vector.extract_strided_slice %49 {offsets = [0, 113], sizes = [8, 640], strides = [1, 1]} : vector<8x896xbf16> to vector<8x640xbf16>
    %53 = vector.extract_strided_slice %47 {offsets = [0, 127], sizes = [8, 640], strides = [1, 1]} : vector<8x896xbf16> to vector<8x640xbf16>
    %54 = vector.extract_strided_slice %45 {offsets = [0, 128], sizes = [8, 640], strides = [1, 1]} : vector<8x896xbf16> to vector<8x640xbf16>
    %55 = vector.extract_strided_slice %49 {offsets = [0, 129], sizes = [8, 640], strides = [1, 1]} : vector<8x896xbf16> to vector<8x640xbf16>
    %56 = vector.extract_strided_slice %47 {offsets = [0, 143], sizes = [8, 640], strides = [1, 1]} : vector<8x896xbf16> to vector<8x640xbf16>
    %57 = vector.extract_strided_slice %45 {offsets = [0, 144], sizes = [8, 640], strides = [1, 1]} : vector<8x896xbf16> to vector<8x640xbf16>
    %58 = vector.extract_strided_slice %49 {offsets = [0, 145], sizes = [8, 640], strides = [1, 1]} : vector<8x896xbf16> to vector<8x640xbf16>
    %59 = tpu.concatenate %50, %51, %52, %53, %54, %55, %56, %57, %58 in 0 : vector<8x640xbf16>, vector<8x640xbf16>, vector<8x640xbf16>, vector<8x640xbf16>, vector<8x640xbf16>, vector<8x640xbf16>, vector<8x640xbf16>, vector<8x640xbf16>, vector<8x640xbf16> -> vector<72x640xbf16>
    %c0_36 = arith.constant 0 : index
    %c0_37 = arith.constant 0 : index
    %60 = vector.load %arg4[%c0_36, %c0_37] : memref<8x72xbf16, #tpu.memory_space<vmem>>, vector<8x72xbf16>
    %cst_38 = arith.constant dense<0.000000e+00> : vector<8x640xf32>
    %61 = tpu.matmul %60, %59, %cst_38 {dimension_numbers = #tpu.dot_dimension_numbers<[1], [0], [0], [1], [0, 0, 1, 1], [], []>} : vector<8x72xbf16>, vector<72x640xbf16>, vector<8x640xf32> -> vector<8x640xf32>
    %c0_39 = arith.constant 0 : index
    %c0_40 = arith.constant 0 : index
    %62 = vector.load %arg5[%c0_39, %c0_40] : memref<8x1xf32, #tpu.memory_space<vmem>>, vector<8x1xf32>
    %63 = vector.broadcast %62 : vector<8x1xf32> to vector<8x640xf32>
    %64 = arith.addf %61, %63 : vector<8x640xf32>
    %cst_41 = arith.constant 0.000000e+00 : f32
    %65 = vector.broadcast %cst_41 : f32 to vector<8x640xf32>
    %66 = arith.maximumf %64, %65 : vector<8x640xf32>
    %67 = vector.extract_strided_slice %66 {offsets = [0, 0], sizes = [8, 256], strides = [1, 1]} : vector<8x640xf32> to vector<8x256xf32>
    %c0_42 = arith.constant 0 : index
    %c0_43 = arith.constant 0 : index
    %c0_44 = arith.constant 0 : index
    %68 = vector.load %arg9[%c0_42, %c0_43, %c0_44] : memref<2x8x256xf32, #tpu.memory_space<vmem>>, vector<1x8x256xf32>
    %69 = vector.shape_cast %68 : vector<1x8x256xf32> to vector<8x256xf32>
    %70 = vector.shape_cast %67 : vector<8x256xf32> to vector<1x8x256xf32>
    tpu.vector_store %arg9[%c0_42, %c0_43, %c0_44], %70 {strides = array<i32>} : memref<2x8x256xf32, #tpu.memory_space<vmem>>, vector<1x8x256xf32>,
    %71 = vector.extract_strided_slice %66 {offsets = [0, 384], sizes = [8, 256], strides = [1, 1]} : vector<8x640xf32> to vector<8x256xf32>
    %c1_45 = arith.constant 1 : index
    %c0_46 = arith.constant 0 : index
    %c0_47 = arith.constant 0 : index
    %72 = vector.load %arg9[%c1_45, %c0_46, %c0_47] : memref<2x8x256xf32, #tpu.memory_space<vmem>>, vector<1x8x256xf32>
    %73 = vector.shape_cast %72 : vector<1x8x256xf32> to vector<8x256xf32>
    %74 = vector.shape_cast %71 : vector<8x256xf32> to vector<1x8x256xf32>
    tpu.vector_store %arg9[%c1_45, %c0_46, %c0_47], %74 {strides = array<i32>} : memref<2x8x256xf32, #tpu.memory_space<vmem>>, vector<1x8x256xf32>,
    return
  }
  func.func @transform_0(%arg0: i32) -> (i32, i32, i32) {
    %c0_i32 = arith.constant 0 : i32
    %c0_i32_0 = arith.constant 0 : i32
    %c0_i32_1 = arith.constant 0 : i32
    return %arg0, %c0_i32, %c0_i32_0 : i32, i32, i32
  }
  func.func @transform_1(%arg0: i32) -> (i32, i32) {
    %c0_i32 = arith.constant 0 : i32
    %c0_i32_0 = arith.constant 0 : i32
    %c0_i32_1 = arith.constant 0 : i32
    return %c0_i32, %c0_i32_0 : i32, i32
  }
  func.func @transform_2(%arg0: i32) -> (i32, i32) {
    %c0_i32 = arith.constant 0 : i32
    %c0_i32_0 = arith.constant 0 : i32
    %c0_i32_1 = arith.constant 0 : i32
    return %c0_i32, %c0_i32_0 : i32, i32
  }
  func.func @transform_3(%arg0: i32) -> (i32, i32) {
    %c0_i32 = arith.constant 0 : i32
    %c0_i32_0 = arith.constant 0 : i32
    %c0_i32_1 = arith.constant 0 : i32
    return %c0_i32, %c0_i32_0 : i32, i32
  }
  func.func @transform_4(%arg0: i32) -> (i32, i32) {
    %c0_i32 = arith.constant 0 : i32
    %c0_i32_0 = arith.constant 0 : i32
    %c0_i32_1 = arith.constant 0 : i32
    return %c0_i32, %c0_i32_0 : i32, i32
  }
  func.func @transform_5(%arg0: i32) -> (i32, i32) {
    %c0_i32 = arith.constant 0 : i32
    %c0_i32_0 = arith.constant 0 : i32
    %c0_i32_1 = arith.constant 0 : i32
    return %c0_i32, %c0_i32_0 : i32, i32
  }
  func.func @transform_6(%arg0: i32) -> (i32, i32) {
    %c0_i32 = arith.constant 0 : i32
    %c0_i32_0 = arith.constant 0 : i32
    %c0_i32_1 = arith.constant 0 : i32
    return %c0_i32, %c0_i32_0 : i32, i32
  }
  func.func @transform_7(%arg0: i32) -> (i32, i32) {
    %c0_i32 = arith.constant 0 : i32
    %c0_i32_0 = arith.constant 0 : i32
    %c0_i32_1 = arith.constant 0 : i32
    return %c0_i32, %c0_i32_0 : i32, i32
  }
  func.func @transform_8(%arg0: i32) -> (i32, i32, i32) {
    %c0_i32 = arith.constant 0 : i32
    %c0_i32_0 = arith.constant 0 : i32
    %c0_i32_1 = arith.constant 0 : i32
    return %arg0, %c0_i32, %c0_i32_0 : i32, i32, i32
  }
}

</mosaic_0001>

<bundles_post_ra>
// kernel: tpu_custom_call.1
= control target key start
LH: loop header
LB: loop body
LE: loop exit
PB: predicated region body
PF: predicated region fallthrough
CT: control target
= control target key end

     0   :  { %13 = vsyncpa [#allocation5], 0  ;;  %s2701_s0 = inlined_call_operand.vmem [shape: bf16[2,4,256], index: 0, kind: input, shape index: {}]   ;;  %s2702_s1 = inlined_call_operand.hbm [shape: bf16[8,36], index: 1, kind: input, shape index: {}]   ;;  %s2703_s2 = inlined_call_operand.vmem [shape: f32[8,1], index: 2, kind: input, shape index: {}]   ;;  %s2704_s3 = inlined_call_operand.hbm [shape: bf16[8,72], index: 3, kind: input, shape index: {}]   ;;  %s2705_s4 = inlined_call_operand.vmem [shape: f32[8,1], index: 4, kind: input, shape index: {}]   ;;  %s2706_s5 = inlined_call_operand.vmem [shape: bf16[1,896], index: 5, kind: input, shape index: {}]   ;;  %s2707_s6 = inlined_call_operand.vmem [shape: bf16[1,896], index: 6, kind: input, shape index: {}]   ;;  %s2708_s7 = inlined_call_operand.vmem [shape: f32[1,640], index: 7, kind: input, shape index: {}]   ;;  %s2709_s8 = inlined_call_operand.hbm [shape: f32[2,8,256], index: 8, kind: output, shape index: {}]  }
   0x1   :  { %14 = vsyncpa [#allocation8], 0 }
   0x2   :  { %15 = vsyncpa [#allocation6], 0  ;;  %s1814_s27 = smov [#allocation4]   ;;  %s1815_s29 = smov [#allocation7]  }
   0x3   :  { %s24_s28 = sshll.u32 %s1814_s27, 4  ;;  %s36_s30 = sshll.u32 %s1815_s29, 4  ;;  %s25_s28 = int_to_ptr.vmem [resolvable:$true] %s24_s28  ;;  %s37_s30 = int_to_ptr.vmem [resolvable:$true] %s36_s30 }
   0x4   :  { %s1742_s11 = scalar_lea.hbm %s2702_s1, 64 }
   0x5   :  { %p1743_p0 = scmp.ne.s32.totalorder %s2702_s1, %s1742_s11  ;;  %p1746_p1 = scmp.lt.u32.totalorder %s1742_s11, %s2702_s1 }
   0x7   :  { %p1748_p2 = pnand %p1746_p1, %p1743_p0 }
   0x9   :  { %1751 = shalt.err (!%p1748_p2)
}
   0xa   :  { %s1752_s16 = scalar_lea.vmem %s25_s28, 64  ;;  %p1757_p4 = scmp.lt.s32.totalorder %s25_s28, %s25_s28 }
   0xb   :  { %p1753_p3 = scmp.ne.s32.totalorder %s25_s28, %s1752_s16  ;;  %p1758_p5 = scmp.lt.s32.totalorder %s1752_s16, %s1752_s16 }
   0xd   :  { %p1759_p6 = por %p1758_p5, %p1757_p4 }
   0xf   :  { %p1760_p7 = pnand %p1759_p6, %p1753_p3 }
  0x11   :  { %1763 = shalt.err (!%p1760_p7)
}
  0x12   :  { %27 = dma.hbm_to_vmem [thread:$0]  %s2702_s1, 64, %s25_s28, [#allocation5]  }
  0x13   :  { %s1764_s21 = scalar_lea.hbm %s2704_s3, 64 }
  0x14   :  { %p1765_p8 = scmp.ne.s32.totalorder %s2704_s3, %s1764_s21  ;;  %p1768_p9 = scmp.lt.u32.totalorder %s1764_s21, %s2704_s3 }
  0x16   :  { %p1770_p10 = pnand %p1768_p9, %p1765_p8 }
  0x18   :  { %1773 = shalt.err (!%p1770_p10)
}
  0x19   :  { %s1774_s26 = scalar_lea.vmem %s37_s30, 64  ;;  %p1779_p12 = scmp.lt.s32.totalorder %s37_s30, %s37_s30 }
  0x1a   :  { %p1775_p11 = scmp.ne.s32.totalorder %s37_s30, %s1774_s26  ;;  %p1780_p13 = scmp.lt.s32.totalorder %s1774_s26, %s1774_s26 }
  0x1c   :  { %p1781_p0 = por %p1780_p13, %p1779_p12 }
  0x1e   :  { %p1782_p1 = pnand %p1781_p0, %p1775_p11 }
  0x20   :  { %1785 = shalt.err (!%p1782_p1)
}
  0x21   :  { %39 = dma.hbm_to_vmem [thread:$0]  %s2704_s3, 64, %s37_s30, [#allocation8]  }
  0x22   :  { %1808 = dma.done.wait [#allocation5], 64  }
  0x23   :  { %1809 = vsyncadd [#allocation5], 4294967232 }
  0x24   :  { %1810 = dma.done.wait [#allocation8], 64  }
  0x25   :  { %1811 = vsyncadd [#allocation8], 4294967232  ;;  %v75_v0 = vlaneseq  ;;  %v2710_v1 = vmov 0   ;;  %v1817_v3 = vmov 1966171168   ;;  %s1822_s13 = smov 111  }
  0x26   :  { %55 = vst [vmem:[#allocation2] sm:$0x3] %v2710_v1  ;;  %58 = vst [vmem:[#allocation2 + $0x6] sm:$0x3] %v2710_v1  ;;  %875 = vmatprep.mubr.bf16.mxu0 %v2710_v1  ;;  %916 = vmatprep.mubr.bf16.mxu1 %v2710_v1  ;;  %v73_v4 = vunpack.c.l.s4 %v1817_v3  ;;  %v1818_v5 = vmov 1983009808  }
  0x27   :  { %62 = vst [vmem:[#allocation2 + $0xc] sm:$0x3] %v2710_v1  ;;  %63 = vst [vmem:[#allocation3] sm:$0xf] %v2710_v1  ;;  %v1909_v2 = vshrl.u32 %v75_v0, 7  ;;  %1728 = vset.pattern.permute.xlu1 %v2710_v1  ;;  %1729 = vset.pattern.permute.xlu0 %v2710_v1  ;;  %v178_v6 = vunpack.c.l.s4 %v1818_v5  ;;  %s1823_s14 = smov 110  }
  0x28   :  { %64 = vst [vmem:[#allocation3 + $0x18] sm:$0xf] %v2710_v1  ;;  %v74_v7 = vunpack.c.0.s8 %v73_v4  ;;  %v56_v9 = vld [vmem:[%s2701_s0] sm:$0xf]  ;;  %v1629_v11 = vld [vmem:[%s2701_s0 + $0x4] sm:$0xf] }
  0x29   :  { %v179_v10 = vunpack.c.0.s8 %v178_v6  ;;  %v66_v12 = vld [vmem:[%s2707_s6] sm:$0x7f]  ;;  %57 = vst [vmem:[#allocation2 + $0x2] sm:$0xf] %v56_v9  ;;  %61 = vst [vmem:[#allocation2 + $0x8] sm:$0xf] %v1629_v11 }
  0x2a   :  { %v1914_v8 = vsub.s32 %v74_v7, %v1909_v2  ;;  %v213_v13 = vcombine.high %v66_v12, %v66_v12  ;;  %v65_v15 = vld [vmem:[%s2706_s5] sm:$0x7f]  ;;  %v1931_v18 = vsub.s32 0, %v1909_v2  ;;  %s1819_s0 = smov 127   ;;  %s1820_s5 = smov 126   ;;  %vm473_vm0 = vcmask 1031168  }
  0x2b   :  { %v71_v17 = vcombine.high %v65_v15, %v65_v15  ;;  %v1936_v22 = vsub.s32 %v179_v10, %v1909_v2  ;;  %s1821_s6 = smov 112   ;;  %s1824_s15 = smov 96   ;;  %vm650_vm1 = vcmask 769024   ;;  %vm428_vm2 = vcmask 1039360  }
  0x2c   :  { %v220_v14 = vrot.slane %v66_v12, %v1914_v8  ;;  %v78_v16 = vrot.slane %v65_v15, %v1914_v8  ;;  %v227_v19 = vrot.slane %v213_v13, %v1914_v8  ;;  %s1825_s16 = smov 95   ;;  %s1826_s17 = smov 94   ;;  %vm656_vm3 = vcmask 1041408  }
  0x2d   :  { %v85_v25 = vrot.slane %v71_v17, %v1914_v8  ;;  %vm675_vm4 = vcmask 1043456   ;;  %vm510_vm5 = vcmask 916480   ;;  %s1827_s18 = smov 17   ;;  %vm536_vm6 = vcmask 908288  }
  0x2e   :  { %v228_v20 = vcombine.high %v220_v14, %v220_v14  ;;  %v236_v21 = vrot.slane %v220_v14, %v1914_v8  ;;  %v86_v23 = vcombine.high %v78_v16, %v78_v16  ;;  %v94_v24 = vrot.slane %v78_v16, %v1914_v8 }
  0x2f   :  { %v229_v26 = vcombine.high %v227_v19, %v227_v19  ;;  %v243_v27 = vrot.slane %v227_v19, %v1914_v8  ;;  %v87_v12 = vcombine.high %v85_v25, %v85_v25  ;;  %v101_v13 = vrot.slane %v85_v25, %v1914_v8 }
  0x30   :  { %v250_v28 = vrot.slane %v228_v20, %v1914_v8  ;;  %v258_v29 = vcombine.high %v236_v21, %v236_v21  ;;  %v262_v30 = vpack.i.b16 %v236_v21, %v236_v21  ;;  %v108_v31 = vrot.slane %v86_v23, %v1914_v8  ;;  %v1944_v38 = vld [vmem:[#allocation2] sm:$0xff]  ;;  %v1946_v39 = vld [vmem:[#allocation2 + $0x8] sm:$0x3f] }
  0x31   :  { %v116_v32 = vcombine.high %v94_v24, %v94_v24  ;;  %v120_v33 = vpack.i.b16 %v94_v24, %v94_v24  ;;  %v257_v34 = vrot.slane %v229_v26, %v1914_v8  ;;  %v259_v35 = vcombine.high %v243_v27, %v243_v27 }
  0x32   :  { %v290_v36 = vpack.i.b16 %v243_v27, %v243_v27  ;;  %v260_v37 = vcombine.high %v250_v28, %v250_v28  ;;  %v267_v40 = vrot.slane %v262_v30, %v1931_v18  ;;  %v269_v41 = vpack.i.b16 %v250_v28, %v250_v28 }
  0x33   :  { %v276_v42 = vpack.i.b16 %v258_v29, %v258_v29  ;;  %v118_v43 = vcombine.high %v108_v31, %v108_v31  ;;  %v1951_v44 = vrot.slane %v1944_v38, %v1936_v22  ;;  %v383_v45 = vcombine.low %v1944_v38, %v1944_v38 }
  0x34   :  { %v295_v46 = vrot.slane %v290_v36, %v1931_v18  ;;  %v297_v47 = vpack.i.b16 %v257_v34, %v257_v34  ;;  %v304_v48 = vpack.i.b16 %v259_v35, %v259_v35  ;;  %v400_v49 = vcombine.low %v1946_v39, %v1946_v39 }
  0x35   :  { %v274_v50 = vrot.slane %v269_v41, %v1931_v18  ;;  %v281_v51 = vrot.slane %v276_v42, %v1931_v18  ;;  %420 = vrot.lane.b32.xlu0 %v1951_v44, %s1819_s0  ;;  %v1964_v52 = vcombine.high %v1951_v44, %v1951_v44  ;;  %v1967_v53 = vrot.slane %v383_v45, %v1936_v22 }
  0x36   :  { %v302_v54 = vrot.slane %v297_v47, %v1931_v18  ;;  %v283_v55 = vpack.i.b16 %v260_v37, %v260_v37  ;;  %v1971_v56 = vrot.slane %v304_v48, %v1931_v18  ;;  %v1974_v57 = vrot.slane %v400_v49, %v1936_v22 }
  0x37   :  { %v1976_v58 = vcombine.low %v267_v40, %v274_v50  ;;  %v125_v59 = vrot.slane %v120_v33, %v1931_v18  ;;  %422 = vrot.lane.b32.xlu1 %v1964_v52, %s1819_s0  ;;  %v398_v60 = vcombine.high %v1967_v53, %v1967_v53  ;;  %v127_v63 = vpack.i.b16 %v108_v31, %v108_v31 }
  0x38   :  { %v1983_v61 = vcombine.low %v295_v46, %v302_v54  ;;  %v288_v62 = vrot.slane %v283_v55, %v1931_v18  ;;  %v348_v0 = vrot.slane %v1971_v56, %v1936_v22  ;;  %v415_v3 = vcombine.high %v1974_v57, %v1974_v57 }
  0x39   :  { %v325_v4 = vrot.slane %v1976_v58, %v1936_v22  ;;  %v134_v5 = vpack.i.b16 %v116_v32, %v116_v32  ;;  %418 = vrot.lane.b32.xlu0 %v398_v60, %s1819_s0  ;;  %v132_v9 = vrot.slane %v127_v63, %v1931_v18  ;;  %v141_v10 = vpack.i.b16 %v118_v43, %v118_v43 }
  0x3a   :  { %v341_v6 = vrot.slane %v1983_v61, %v1936_v22  ;;  %v1995_v7 = vcombine.low %v281_v51, %v288_v62  ;;  %v115_v19 = vrot.slane %v87_v12, %v1914_v8  ;;  %v117_v20 = vcombine.high %v101_v13, %v101_v13 }
  0x3b   :  { %v139_v11 = vrot.slane %v134_v5, %v1931_v18  ;;  %424 = vrot.lane.b32.xlu1 %v1974_v57, %s1819_s0  ;;  %v146_v16 = vrot.slane %v141_v10, %v1931_v18  ;;  %v2005_v17 = vcombine.low %v125_v59, %v132_v9  ;;  %v148_v21 = vpack.i.b16 %v101_v13, %v101_v13 }
  0x3c   :  { %v349_v14 = vcombine.low %v341_v6, %v348_v0  ;;  %v332_v15 = vrot.slane %v1995_v7, %v1936_v22  ;;  %v155_v28 = vpack.i.b16 %v115_v19, %v115_v19  ;;  %v162_v29 = vpack.i.b16 %v117_v20, %v117_v20 }
  0x3d   :  { %426 = vrot.lane.b32.xlu0 %v415_v3, %s1819_s0  ;;  %v2012_v25 = vcombine.low %v139_v11, %v146_v16  ;;  %v183_v26 = vrot.slane %v2005_v17, %v1936_v22  ;;  %v153_v27 = vrot.slane %v148_v21, %v1931_v18  ;;  %v414_v10 = vrot.slane %v1946_v39, %v1936_v22 }
  0x3e   :  { %v2009_v23 = vmul.bf16 %v349_v14, %v1946_v39  ;;  %v333_v24 = vcombine.low %v325_v4, %v332_v15  ;;  %v160_v32 = vrot.slane %v155_v28, %v1931_v18  ;;  %v2028_v33 = vrot.slane %v162_v29, %v1931_v18 }
  0x3f   :  { %416 = vrot.lane.b32.xlu1 %v1967_v53, %s1819_s0  ;;  %v190_v31 = vrot.slane %v2012_v25, %v1936_v22  ;;  %v516_v4 = vcombine.high %v1944_v38, %v1944_v38  ;;  %v609_v28 = vcombine.low %v414_v10, %v414_v10  ;;  %vm688_vm7 = vcmask 1045504  }
  0x40   :  { %v352_v8 = vmul.bf16 %v333_v24, %v1944_v38  ;;  %v2022_v30 = vrot.slane %v2009_v23, %v1936_v22  ;;  %v2033_v37 = vcombine.low %v153_v27, %v160_v32  ;;  %v206_v40 = vrot.slane %v2028_v33, %v1936_v22 }
  0x41   :  { %v191_v36 = vcombine.low %v183_v26, %v190_v31  ;;  %v629_v51 = vcombine.high %v2009_v23, %v2009_v23  ;;  %v523_v5 = vrot.slane %v516_v4, %v1936_v22  ;;  %v551_v13 = vcombine.low %v2009_v23, %v2009_v23 }
  0x42   :  { %v443_v34 = vrot.slane %v352_v8, %v1936_v22  ;;  %v460_v35 = vcombine.low %v2022_v30, %v2022_v30  ;;  %2713 = vst [vmem:[#allocation13_spill] sm:$0xff] %v2033_v37  ;;  %v436_v43 = vcombine.high %v352_v8, %v352_v8  ;;  %v199_v45 = vrot.slane %v2033_v37, %v1936_v22 }
  0x43   :  { %v210_v42 = vmul.bf16 %v191_v36, %v1944_v38  ;;  %v2066_v60 = vrot.slane %v629_v51, %v1936_v22  ;;  %v541_v6 = vcombine.low %v352_v8, %v352_v8  ;;  %v524_v9 = vcombine.high %v523_v5, %v523_v5 }
  0x44   :  { %463 = vrot.lane.b32.xlu0 %v443_v34, %s1820_s5  ;;  %469 = vrot.lane.b32.xlu1 %v460_v35, %s1820_s5  ;;  %v451_v41 = vcombine.low %v443_v34, %v443_v34  ;;  %v207_v47 = vcombine.low %v199_v45, %v206_v40  ;;  %v2051_v49 = vrot.slane %v436_v43, %v1936_v22  ;;  %vm572_vm8 = vcmask 900096  }
  0x45   :  { %v2043_v46 = vrot.slane %v210_v42, %v1936_v22  ;;  %v479_v59 = vcombine.low %v210_v42, %v210_v42  ;;  %v548_v11 = vrot.slane %v541_v6, %v1936_v22  ;;  %v525_v38 = vcombine.high %v414_v10, %v414_v10 }
  0x46   :  { %v2054_v50 = vmul.bf16 %v207_v47, %v1946_v39  ;;  %v452_v55 = vcombine.low %v2051_v49, %v2051_v49  ;;  %v558_v14 = vrot.slane %v551_v13, %v1936_v22  ;;  %v356_v39 = vcombine.high %v210_v42, %v210_v42 }
  0x47   :  { %v488_v48 = vcombine.low %v2043_v46, %v2043_v46  ;;  %v486_v63 = vrot.slane %v479_v59, %v1936_v22  ;;  %v549_v12 = vcombine.high %v548_v11, %v548_v11  ;;  %v607_v23 = vcombine.low %v1951_v44, %v1951_v44 }
  0x48   :  { %471 = vrot.lane.b32.xlu0 %v2022_v30, %s1820_s5  ;;  %461 = vrot.lane.b32.xlu1 %v451_v41, %s1820_s5  ;;  %v489_v54 = vcombine.low %v2054_v50, %v2054_v50  ;;  %v559_v15 = vcombine.high %v558_v14, %v558_v14  ;;  %v2096_v16 = vrot.slane %v356_v39, %v1936_v22  ;;  %vm601_vm9 = vcmask 785408  }
  0x49   :  { %v487_v3 = vcombine.low %v486_v63, %v486_v63  ;;  %v2104_v20 = vrot.slane %v2054_v50, %v1936_v22  ;;  %v608_v24 = vcombine.low %v1974_v57, %v1974_v57  ;;  %vm622_vm10 = vcmask 777216  }
  0x4a   :  { %v496_v62 = vrot.slane %v489_v54, %v1936_v22  ;;  %v578_v19 = vcombine.low %v2096_v16, %v2096_v16  ;;  %vm798_vm11 = vcmask 138240   ;;  %vm824_vm12 = vcmask 293888  }
  0x4b   :  { %v587_v21 = vcombine.low %v2104_v20, %v2104_v20  ;;  %vm1829_vm13 = vmmov 0   ;;  %vm1462_vm14 = vcmask 588800  }
  0x4c   :  { %504 = vrot.lane.b32.xlu0 %v2043_v46, %s1821_s6  ;;  %502 = vrot.lane.b32.xlu1 %v488_v48, %s1821_s6  ;;  %v497_v0 = vcombine.low %v496_v62, %v496_v62 }
  0x50   :  { %467 = vrot.lane.b32.xlu0 %v2051_v49, %s1820_s5  ;;  %465 = vrot.lane.b32.xlu1 %v452_v55, %s1820_s5 }
  0x54   :  { %500 = vrot.lane.b32.xlu0 %v486_v63, %s1821_s6  ;;  %506 = vrot.lane.b32.xlu1 %v497_v0, %s1821_s6 }
  0x58   :  { %508 = vrot.lane.b32.xlu0 %v496_v62, %s1821_s6  ;;  %498 = vrot.lane.b32.xlu1 %v487_v3, %s1821_s6 }
  0x5c   :  { %526 = vrot.lane.b32.xlu0 %v1964_v52, %s1822_s13  ;;  %528 = vrot.lane.b32.xlu1 %v523_v5, %s1822_s13  ;;  %v550_v52 = vcombine.high %v443_v34, %v443_v34 }
  0x60   :  { %530 = vrot.lane.b32.xlu0 %v524_v9, %s1822_s13  ;;  %532 = vrot.lane.b32.xlu1 %v414_v10, %s1822_s13 }
  0x64   :  { %534 = vrot.lane.b32.xlu0 %v525_v38, %s1822_s13  ;;  %560 = vrot.lane.b32.xlu1 %v549_v12, %s1823_s14 }
  0x68   :  { %562 = vrot.lane.b32.xlu0 %v443_v34, %s1823_s14  ;;  %564 = vrot.lane.b32.xlu1 %v550_v52, %s1823_s14 }
  0x6c   :  { %566 = vrot.lane.b32.xlu0 %v558_v14, %s1823_s14  ;;  %568 = vrot.lane.b32.xlu1 %v559_v15, %s1823_s14 }
  0x70   :  { %589 = vrot.lane.b32.xlu0 %v2043_v46, %s1824_s15  ;;  %591 = vrot.lane.b32.xlu1 %v578_v19, %s1824_s15 }
  0x74   :  { %593 = vrot.lane.b32.xlu0 %v2096_v16, %s1824_s15  ;;  %595 = vrot.lane.b32.xlu1 %v587_v21, %s1824_s15 }
  0x78   :  { %597 = vrot.lane.b32.xlu0 %v2104_v20, %s1824_s15  ;;  %610 = vrot.lane.b32.xlu1 %v1967_v53, %s1825_s16  ;;  %v628_v53 = vcombine.high %v2051_v49, %v2051_v49 }
  0x7c   :  { %612 = vrot.lane.b32.xlu0 %v607_v23, %s1825_s16  ;;  %614 = vrot.lane.b32.xlu1 %v1951_v44, %s1825_s16  ;;  %v579_v44 = vcombine.high %v2054_v50, %v2054_v50 }
  0x7e   :  { %v586_v26 = vrot.slane %v579_v44, %v1936_v22 }
  0x80   :  { %616 = vrot.lane.b32.xlu0 %v608_v24, %s1825_s16  ;;  %618 = vrot.lane.b32.xlu1 %v1974_v57, %s1825_s16  ;;  %v637_v57 = vcombine.high %v2022_v30, %v2022_v30  ;;  %v588_v27 = vcombine.low %v586_v26, %v586_v26  ;;  %v372_v24 = vcombine.high %v2096_v16, %v2096_v16 }
  0x84   :  { %638 = vrot.lane.b32.xlu0 %v550_v52, %s1826_s17  ;;  %640 = vrot.lane.b32.xlu1 %v2051_v49, %s1826_s17 }
  0x88   :  { %642 = vrot.lane.b32.xlu0 %v628_v53, %s1826_s17  ;;  %644 = vrot.lane.b32.xlu1 %v2022_v30, %s1826_s17 }
  0x8c   :  { %646 = vrot.lane.b32.xlu0 %v637_v57, %s1826_s17  ;;  %570 = vrot.lane.b32.xlu1 %v2022_v30, %s1823_s14 }
  0x90   :  { %599 = vrot.lane.b32.xlu0 %v588_v27, %s1824_s15  ;;  %620 = vrot.lane.b32.xlu1 %v609_v28, %s1825_s16 }
  0x94   :  { %648 = vrot.lane.b32.xlu0 %v2066_v60, %s1826_s17 }
  0xa7   :  { %v2148_v29 = vpop.permute.xlu0 %420 }
  0xa9   :  { %v423_v8 = vpop.permute.xlu1 %422 }
  0xaa   :  { %v431_v57 = vsel %vm428_vm2, %v2148_v29, %v423_v8 }
  0xab   :  { %v2150_v31 = vpop.permute.xlu0 %418 }
  0xad   :  { %v425_v22 = vpop.permute.xlu1 %424 }
  0xae   :  { %v432_v26 = vsel %vm428_vm2, %v423_v8, %v425_v22 }
  0xaf   :  { %v2152_v32 = vpop.permute.xlu0 %426 }
  0xb0   :  { %v433_v39 = vsel %vm428_vm2, %v425_v22, %v2152_v32 }
  0xb1   :  { %v2154_v34 = vpop.permute.xlu1 %416  ;;  %v671_v44 = vsel %vm656_vm3, %v2104_v20, %v433_v39 }
  0xb6   :  { %v2156_v30 = vpop.permute.xlu0 %463  ;;  %v470_v35 = vpop.permute.xlu1 %469 }
  0xba   :  { %v2158_v36 = vpop.permute.xlu0 %471  ;;  %v2160_v40 = vpop.permute.xlu1 %461 }
  0xbb   :  { %v478_v21 = vsel %vm473_vm0, %v470_v35, %v2158_v36 }
  0xbe   :  { %v2162_v41 = vpop.permute.xlu0 %504  ;;  %v2164_v42 = vpop.permute.xlu1 %502 }
  0xc2   :  { %v2166_v43 = vpop.permute.xlu0 %467  ;;  %v2168_v45 = vpop.permute.xlu1 %465 }
  0xc6   :  { %v2170_v47 = vpop.permute.xlu0 %500  ;;  %v507_v48 = vpop.permute.xlu1 %506 }
  0xc7   :  { %v514_v22 = vsel %vm510_vm5, %v2162_v41, %v507_v48 }
  0xca   :  { %v2172_v49 = vpop.permute.xlu0 %508  ;;  %v2174_v50 = vpop.permute.xlu1 %498 }
  0xcb   :  { %v515_v53 = vsel %vm510_vm5, %v507_v48, %v2172_v49  ;;  %v476_v48 = vsel %vm473_vm0, %v2168_v45, %v2166_v43 }
  0xce   :  { %v2176_v51 = vpop.permute.xlu0 %526  ;;  %v2178_v54 = vpop.permute.xlu1 %528 }
  0xd2   :  { %v2180_v55 = vpop.permute.xlu0 %530  ;;  %v2182_v59 = vpop.permute.xlu1 %532 }
  0xd3   :  { %v539_v37 = vsel %vm536_vm6, %v2180_v55, %v2182_v59 }
  0xd6   :  { %v2184_v60 = vpop.permute.xlu0 %534  ;;  %v2186_v62 = vpop.permute.xlu1 %560 }
  0xda   :  { %v2188_v63 = vpop.permute.xlu0 %562  ;;  %v2190_v0 = vpop.permute.xlu1 %564 }
  0xde   :  { %v2192_v3 = vpop.permute.xlu0 %566  ;;  %v2194_v4 = vpop.permute.xlu1 %568 }
  0xdf   :  { %v575_v27 = vsel %vm572_vm8, %v2190_v0, %v2192_v3 }
  0xe2   :  { %v2196_v5 = vpop.permute.xlu0 %589  ;;  %v2198_v6 = vpop.permute.xlu1 %591 }
  0xe6   :  { %v2200_v9 = vpop.permute.xlu0 %593  ;;  %v2202_v10 = vpop.permute.xlu1 %595 }
  0xe7   :  { %v604_v39 = vsel %vm601_vm9, %v2200_v9, %v2202_v10 }
  0xea   :  { %v2204_v11 = vpop.permute.xlu0 %597  ;;  %v2206_v38 = vpop.permute.xlu1 %610 }
  0xee   :  { %v2208_v12 = vpop.permute.xlu0 %612  ;;  %v2210_v13 = vpop.permute.xlu1 %614 }
  0xf2   :  { %v2212_v52 = vpop.permute.xlu0 %616  ;;  %v2214_v14 = vpop.permute.xlu1 %618 }
  0xf6   :  { %v639_v15 = vpop.permute.xlu0 %638  ;;  %v641_v19 = vpop.permute.xlu1 %640 }
  0xf7   :  { %786 = vrot.lane.b32.xlu1 %v639_v15, %s1827_s18  ;;  %v651_v23 = vsel %vm650_vm1, %v639_v15, %v641_v19  ;;  %v685_v15 = vsel %vm675_vm4, %v671_v44, %v478_v21  ;;  %v668_v21 = vsel %vm656_vm3, %v372_v24, %v432_v26  ;;  %v665_v44 = vsel %vm656_vm3, %v2096_v16, %v431_v57 }
  0xf8   :  { %788 = vrot.lane.b32.xlu0 %v651_v23, %s1827_s18  ;;  %v477_v23 = vsel %vm473_vm0, %v2166_v43, %v470_v35  ;;  %v698_v8 = vsel %vm688_vm7, %v685_v15, %v515_v53  ;;  %v625_v35 = vsel %vm622_vm10, %v2210_v13, %v2212_v52  ;;  %v712_v53 = vsel %vm656_vm3, %v539_v37, %v575_v27 }
  0xf9   :  { %v683_v15 = vsel %vm675_vm4, %v668_v21, %v477_v23  ;;  %v430_v24 = vsel %vm428_vm2, %v2150_v31, %v2148_v29  ;;  %v474_v43 = vsel %vm473_vm0, %v2160_v40, %v2156_v30  ;;  %v511_v57 = vsel %vm510_vm5, %v2174_v50, %v2170_v47 }
  0xfa   :  { %v2235_v28 = vpop.permute.xlu0 %642  ;;  %v696_v37 = vsel %vm688_vm7, %v683_v15, %v514_v22  ;;  %v681_v29 = vsel %vm675_vm4, %v665_v44, %v476_v48  ;;  %v513_v26 = vsel %vm510_vm5, %v2164_v42, %v2162_v41  ;;  %v645_v41 = vpop.permute.xlu1 %644  ;;  %v623_v21 = vsel %vm622_vm10, %v2206_v38, %v2208_v12 }
  0xfb   :  { %v652_v1 = vsel %vm650_vm1, %v641_v19, %v2235_v28  ;;  %v371_v19 = vcombine.high %v2043_v46, %v2043_v46  ;;  %v694_v27 = vsel %vm688_vm7, %v681_v29, %v513_v26  ;;  %v540_v44 = vsel %vm536_vm6, %v2182_v59, %v2184_v60 }
  0xfc   :  { %790 = vrot.lane.b32.xlu1 %v652_v1, %s1827_s18  ;;  %770 = vrot.lane.b32.xlu0 %v698_v8, %s1827_s18  ;;  %v429_v1 = vsel %vm428_vm2, %v2154_v34, %v2150_v31  ;;  %v726_v8 = vsel %vm675_vm4, %v712_v53, %v604_v39  ;;  %v475_v34 = vsel %vm473_vm0, %v2156_v30, %v2168_v45 }
  0xfd   :  { %v738_v16 = vsel %vm688_vm7, %v726_v8, %v625_v35  ;;  %v659_v31 = vsel %vm656_vm3, %v2043_v46, %v429_v1  ;;  %v662_v40 = vsel %vm656_vm3, %v371_v19, %v430_v24  ;;  %v512_v45 = vsel %vm510_vm5, %v2170_v47, %v2164_v42 }
  0xfe   :  { %v677_v30 = vsel %vm675_vm4, %v659_v31, %v474_v43  ;;  %v679_v23 = vsel %vm675_vm4, %v662_v40, %v475_v34  ;;  %v703_v46 = vsel %vm656_vm3, %v2176_v51, %v2186_v62  ;;  %v573_v39 = vsel %vm572_vm8, %v2186_v62, %v2188_v63 }
  0xff   :  { %v690_v50 = vsel %vm688_vm7, %v677_v30, %v511_v57  ;;  %v574_v42 = vsel %vm572_vm8, %v2188_v63, %v2190_v0  ;;  %v720_v47 = vsel %vm675_vm4, %v703_v46, %v2196_v5  ;;  %v692_v22 = vsel %vm688_vm7, %v679_v23, %v512_v45 }
 0x100   :  { %768 = vrot.lane.b32.xlu1 %v696_v37, %s1827_s18  ;;  %780 = vrot.lane.b32.xlu0 %v738_v16, %s1827_s18  ;;  %v537_v35 = vsel %vm536_vm6, %v2176_v51, %v2178_v54  ;;  %v602_v19 = vsel %vm601_vm9, %v2196_v5, %v2198_v6  ;;  %v603_v62 = vsel %vm601_vm9, %v2198_v6, %v2200_v9  ;;  %v647_v5 = vpop.permute.xlu0 %646 }
 0x101   :  { %v732_v63 = vsel %vm688_vm7, %v720_v47, %v2206_v38  ;;  %v538_v0 = vsel %vm536_vm6, %v2178_v54, %v2180_v55  ;;  %v624_v51 = vsel %vm622_vm10, %v2208_v12, %v2210_v13  ;;  %v706_v6 = vsel %vm656_vm3, %v537_v35, %v573_v39  ;;  %v571_v13 = vpop.permute.xlu1 %570 }
 0x102   :  { %v709_v9 = vsel %vm656_vm3, %v538_v0, %v574_v42  ;;  %v576_v54 = vsel %vm572_vm8, %v2192_v3, %v2194_v4  ;;  %v722_v38 = vsel %vm675_vm4, %v706_v6, %v602_v19  ;;  %v605_v12 = vsel %vm601_vm9, %v2202_v10, %v2204_v11 }
 0x103   :  { %v724_v55 = vsel %vm675_vm4, %v709_v9, %v603_v62  ;;  %v734_v53 = vsel %vm688_vm7, %v722_v38, %v623_v21  ;;  %v626_v3 = vsel %vm622_vm10, %v2212_v52, %v2214_v14  ;;  %v380_v10 = vcombine.high %v2104_v20, %v2104_v20 }
 0x104   :  { %762 = vrot.lane.b32.xlu1 %v690_v50, %s1827_s18  ;;  %766 = vrot.lane.b32.xlu0 %v694_v27, %s1827_s18  ;;  %v736_v48 = vsel %vm688_vm7, %v724_v55, %v624_v51  ;;  %v715_v1 = vsel %vm656_vm3, %v540_v44, %v576_v54  ;;  %v577_v15 = vsel %vm572_vm8, %v2194_v4, %v571_v13  ;;  %v600_v8 = vpop.permute.xlu0 %599  ;;  %v743_v54 = vld [vmem:[#allocation4] sm:$0xf] }
 0x105   :  { %v728_v24 = vsel %vm675_vm4, %v715_v1, %v605_v12  ;;  %v653_v52 = vsel %vm650_vm1, %v2235_v28, %v645_v41  ;;  %v674_v20 = vsel %vm656_vm3, %v380_v10, %v2152_v32  ;;  %v718_v43 = vsel %vm656_vm3, %v2184_v60, %v577_v15  ;;  %v621_v37 = vpop.permute.xlu1 %620 }
 0x106   :  { %v740_v59 = vsel %vm688_vm7, %v728_v24, %v626_v3  ;;  %v606_v4 = vsel %vm601_vm9, %v2204_v11, %v600_v8  ;;  %v654_v16 = vsel %vm650_vm1, %v645_v41, %v647_v5  ;;  %v687_v34 = vsel %vm675_vm4, %v674_v20, %v2158_v36  ;;  %v744_v36 = vld [vmem:[%s2703_s2] sm:$0xff] }
 0x107   :  { %v700_v28 = vsel %vm688_vm7, %v687_v34, %v2172_v49  ;;  %v627_v57 = vsel %vm622_vm10, %v2214_v14, %v621_v37  ;;  %v730_v32 = vsel %vm675_vm4, %v718_v43, %v606_v4  ;;  %v1828_v12 = vmov 0.0  }
 0x108   :  { %764 = vrot.lane.b32.xlu1 %v692_v22, %s1827_s18  ;;  %774 = vrot.lane.b32.xlu0 %v732_v63, %s1827_s18  ;;  %v649_v29 = vpop.permute.xlu0 %648  ;;  %v742_v60 = vsel %vm688_vm7, %v730_v32, %v627_v57  ;;  %v2714_v15 = vmov 0   ;;  %v1645_v24 = vcombine.low %v1971_v56, %v1971_v56  ;;  %v1641_v20 = vcombine.low %v2028_v33, %v2028_v33  ;;  %v67_v56 = vld [vmem:[%s2708_s7] sm:$0x1f] }
 0x109   :  { %v655_v11 = vsel %vm650_vm1, %v647_v5, %v649_v29  ;;  %v977_v34 = vsub.s32 1, %v1909_v2  ;;  %v974_v29 = vrot.slane %v67_v56, %v1931_v18 }
 0x10c   :  { %778 = vrot.lane.b32.xlu1 %v736_v48, %s1827_s18  ;;  %776 = vrot.lane.b32.xlu0 %v734_v53, %s1827_s18 }
 0x110   :  { %782 = vrot.lane.b32.xlu1 %v740_v59, %s1827_s18  ;;  %792 = vrot.lane.b32.xlu0 %v653_v52, %s1827_s18  ;;  %v1028_v59 = vld [vmem:[#allocation3 + $0x18] sm:$0xf] }
 0x111   :  { %v1066_v52 = vmul.bf16 %v1645_v24, %v1028_v59  ;;  %v1047_v4 = vmul.bf16 %v1641_v20, %v1028_v59 }
 0x113   :  { %v2424_v43 = vcombine.low %v1066_v52, %v1066_v52  ;;  %v1665_v37 = vcombine.low %v1047_v4, %v1047_v4 }
 0x114   :  { %794 = vrot.lane.b32.xlu1 %v654_v16, %s1827_s18  ;;  %772 = vrot.lane.b32.xlu0 %v700_v28, %s1827_s18  ;;  %v1666_v16 = vcombine.low %v1028_v59, %v1028_v59 }
 0x118   :  { %784 = vrot.lane.b32.xlu1 %v742_v60, %s1827_s18  ;;  %796 = vrot.lane.b32.xlu0 %v655_v11, %s1827_s18  ;;  %v981_v60 = vsub.s32 2, %v1909_v2  ;;  %v978_v11 = vrot.slane %v67_v56, %v977_v34 }
 0x11c   :  { %747 = vperm.xlu1 %1728, %v744_v36   ;;  %1210 = vrot.lane.b32.xlu0 %v1665_v37, %s1824_s15 }
 0x120   :  { %1190 = vrot.lane.b32.xlu1 %v2424_v43, %s1823_s14 }
 0x124   :  { %1230 = vrot.lane.b32.xlu1 %v1666_v16, %s1825_s16 }
 0x169   :  { %v787_v49 = vpop.permute.xlu1 %786 }
 0x16a   :  { %v789_v14 = vpop.permute.xlu0 %788 }
 0x16b   :  { %v809_v62 = vsel %vm798_vm11, %v787_v49, %v789_v14 }
 0x16c   :  { %v829_v6 = vsel %vm656_vm3, %v809_v62, 0  ;;  %v989_v62 = vsub.s32 4, %v1909_v2 }
 0x16e   :  { %v791_v31 = vpop.permute.xlu1 %790  ;;  %v771_v40 = vpop.permute.xlu0 %770 }
 0x16f   :  { %v810_v63 = vsel %vm798_vm11, %v789_v14, %v791_v31  ;;  %v985_v14 = vsub.s32 3, %v1909_v2 }
 0x172   :  { %v769_v26 = vpop.permute.xlu1 %768  ;;  %v781_v30 = vpop.permute.xlu0 %780 }
 0x173   :  { %v802_v45 = vsel %vm798_vm11, %v769_v26, %v771_v40 }
 0x174   :  { %884 = vmatprep.subr.bf16.mxu1 %v802_v45 }
 0x176   :  { %v763_v50 = vpop.permute.xlu1 %762  ;;  %v767_v27 = vpop.permute.xlu0 %766 }
 0x177   :  { %v801_v23 = vsel %vm798_vm11, %v767_v27, %v769_v26 }
 0x178   :  { %885 = vmatpush1.bf16.msra.mxu1 %v801_v23 }
 0x17a   :  { %v765_v46 = vpop.permute.xlu1 %764  ;;  %v775_v41 = vpop.permute.xlu0 %774 }
 0x17b   :  { %v800_v39 = vsel %vm798_vm11, %v765_v46, %v767_v27  ;;  %v799_v42 = vsel %vm798_vm11, %v763_v50, %v765_v46  ;;  %v982_v27 = vrot.slane %v67_v56, %v981_v60 }
 0x17c   :  { %843 = vmatprep.subr.bf16.mxu0 %v800_v39  ;;  %v986_v39 = vrot.slane %v67_v56, %v985_v14 }
 0x17d   :  { %844 = vmatpush1.bf16.msra.mxu0 %v799_v42 }
 0x17e   :  { %v779_v47 = vpop.permute.xlu1 %778  ;;  %v777_v22 = vpop.permute.xlu0 %776 }
 0x17f   :  { %v805_v35 = vsel %vm798_vm11, %v777_v22, %v779_v47  ;;  %v804_v19 = vsel %vm798_vm11, %v775_v41, %v777_v22  ;;  %v806_v5 = vsel %vm798_vm11, %v779_v47, %v781_v30 }
 0x180   :  { %845 = vmatprep.subr.bf16.mxu0 %v805_v35 }
 0x181   :  { %846 = vmatpush1.bf16.msra.mxu0 %v804_v19 }
 0x182   :  { %v783_v0 = vpop.permute.xlu1 %782  ;;  %v793_v21 = vpop.permute.xlu0 %792  ;;  %1630 = vmatprep.subr.msk.bf16.mxu0 %vm656_vm3, %v810_v63 }
 0x183   :  { %v807_v51 = vsel %vm798_vm11, %v781_v30, %v783_v0  ;;  %v811_v9 = vsel %vm798_vm11, %v791_v31, %v793_v21 }
 0x184   :  { %886 = vmatprep.subr.bf16.mxu1 %v807_v51  ;;  %v835_v53 = vsel %vm656_vm3, %v811_v9, 0 }
 0x185   :  { %887 = vmatpush1.bf16.msra.mxu1 %v806_v5  ;;  %848 = vmatpush1.bf16.msra.mxu0 %v829_v6  ;;  %v990_v5 = vrot.slane %v67_v56, %v989_v62 }
 0x186   :  { %v795_v55 = vpop.permute.xlu1 %794  ;;  %v773_v38 = vpop.permute.xlu0 %772  ;;  %1685 = vmatprep.subr.bf16.mxu0 %v1828_v12 }
 0x187   :  { %v812_v13 = vsel %vm798_vm11, %v793_v21, %v795_v55  ;;  %v803_v48 = vsel %vm798_vm11, %v771_v40, %v773_v38 }
 0x188   :  { %1632 = vmatprep.subr.msk.bf16.mxu1 %vm656_vm3, %v812_v13  ;;  %1631 = vmatmul.mubr.msk.bf16.vlgmr.msra.gmra.mrb[0].mxu0 %vm824_vm12, %v743_v54 }
 0x189   :  { %889 = vmatpush1.bf16.msra.mxu1 %v835_v53  ;;  %1686 = vmatpush3.bf16.msra.mxu0 %v803_v48 }
 0x18a   :  { %v785_v44 = vpop.permute.xlu1 %784  ;;  %v797_v3 = vpop.permute.xlu0 %796  ;;  %1687 = vmatprep.subr.bf16.mxu0 %v1828_v12  ;;  %1691 = vmatprep.mubr.msk.bf16.mxu0 %vm1829_vm13, %v1828_v12 }
 0x18b   :  { %v808_v10 = vsel %vm798_vm11, %v783_v0, %v785_v44  ;;  %v813_v1 = vsel %vm798_vm11, %v795_v55, %v797_v3 }
 0x18c   :  { %1633 = vmatmul.mubr.msk.bf16.vlgmr.msra.gmra.mrb[0].mxu1 %vm824_vm12, %v743_v54  ;;  %v841_v8 = vsel %vm656_vm3, %v813_v1, 0 }
 0x18d   :  { %1688 = vmatpush3.bf16.msra.mxu0 %v808_v10  ;;  %1513 = vmatprep.mubr.bf16.mxu1 %v2714_v15 }
 0x18e   :  { %1689 = vmatprep.subr.bf16.mxu0 %v1828_v12 }
 0x191   :  { %1690 = vmatpush3.bf16.msra.mxu0 %v841_v8 }
 0x194   :  { %1692 = vmatmul.mubr.msk.bf16.vlgmr.msra.gmra.mrb[4].mxu0 %vm824_vm12, %v743_v54 }
 0x195   :  { %1554 = vmatprep.mubr.bf16.mxu0 %v2714_v15 }
 0x19b   :  { %v748_v28 = vpop.permute.xlu1 %747 }
 0x25b   :  { %v877_v33 = vpop.f32.mrb[0].mxu0 }
 0x25c   :  { %v879_v57 = vpop.f32.mrb[1].mxu0  ;;  %v878_v32 = vadd.f32 %v877_v33, %v748_v28 }
 0x25d   :  { %v880_v36 = vadd.f32 %v879_v57, %v748_v28  ;;  %v881_v49 = vpop.f32.mrb[2].mxu0  ;;  %v2715_v57 = vld [vmem:[#allocation13_spill] sm:$0xff] }
 0x25e   :  { %v965_v31 = vmax.f32 %v878_v32, 0.0  ;;  %v882_v40 = vpop.f32.mrb[3].mxu0 }
 0x25f   :  { %v966_v26 = vmax.f32 %v880_v36, 0.0  ;;  %v918_v30 = vpop.f32.mrb[0].mxu1 }
 0x260   :  { %v996_v45 = vmul.f32 %v974_v29, %v965_v31  ;;  %v919_v50 = vadd.f32 %v918_v30, %v748_v28  ;;  %v920_v23 = vpop.f32.mrb[1].mxu1 }
 0x261   :  { %v997_v46 = vmul.f32 %v978_v11, %v966_v26  ;;  %v921_v41 = vadd.f32 %v920_v23, %v748_v28  ;;  %v922_v18 = vpop.f32.mrb[2].mxu1  ;;  %v2503_v11 = vpop.permute.xlu0 %1210 }
 0x262   :  { %v967_v42 = vmax.f32 %v919_v50, 0.0  ;;  %v923_v47 = vpop.f32.mrb[3].mxu1 }
 0x263   :  { %v1672_v22 = vpack.c.bf16 %v997_v46, %v996_v45  ;;  %v968_v35 = vmax.f32 %v921_v41, 0.0 }
 0x264   :  { %v998_v19 = vmul.f32 %v982_v27, %v967_v42 }
 0x265   :  { %1022 = vst [vmem:[#allocation3 + $0x4] sm:$0xff] %v1672_v22  ;;  %v999_v63 = vmul.f32 %v986_v39, %v968_v35 }
 0x267   :  { %v1673_v0 = vpack.c.bf16 %v999_v63, %v998_v19  ;;  %v959_v21 = vpop.f32.mrb[4].mxu0 }
 0x268   :  { %v960_v51 = vadd.f32 %v959_v21, %v748_v28  ;;  %v1693_v6 = vpop.f32.mrb[5].mxu0 }
 0x269   :  { %1023 = vst [vmem:[#allocation3 + $0xc] sm:$0xff] %v1673_v0  ;;  %v962_v9 = vpop.f32.mrb[6].mxu0 }
 0x26a   :  { %v969_v54 = vmax.f32 %v960_v51, 0.0  ;;  %v1694_v55 = vpop.f32.mrb[7].mxu0 }
 0x26c   :  { %v1000_v38 = vmul.f32 %v990_v5, %v969_v54  ;;  %v1025_v13 = vld [vmem:[#allocation3] sm:$0xff] }
 0x26d   :  { %v1653_v48 = vcombine.high %v1025_v13, %v1025_v13  ;;  %v1652_v10 = vcombine.low %v1025_v13, %v1025_v13  ;;  %v1063_v1 = vmul.bf16 %v1025_v13, %v1976_v58  ;;  %v1044_v52 = vmul.bf16 %v1025_v13, %v2005_v17 }
 0x26e   :  { %v1674_v53 = vpack.c.bf16 %v1000_v38, %v1000_v38 }
 0x26f   :  { %1099 = vrot.lane.b32.xlu0 %v1653_v48, %s1819_s0  ;;  %v1659_v15 = vcombine.high %v1063_v1, %v1063_v1  ;;  %v1647_v58 = vcombine.high %v1044_v52, %v1044_v52  ;;  %v1658_v37 = vcombine.low %v1063_v1, %v1063_v1  ;;  %v1646_v17 = vcombine.low %v1044_v52, %v1044_v52 }
 0x270   :  { %1024 = vst [vmem:[#allocation3 + $0x14] sm:$0xf] %v1674_v53  ;;  %v1026_v44 = vld [vmem:[#allocation3 + $0x8] sm:$0xff] }
 0x271   :  { %v1654_v2 = vcombine.low %v1026_v44, %v1026_v44  ;;  %v1655_v3 = vcombine.high %v1026_v44, %v1026_v44  ;;  %v1064_v8 = vmul.bf16 %v1026_v44, %v1995_v7  ;;  %v1045_v20 = vmul.bf16 %v1026_v44, %v2012_v25 }
 0x273   :  { %1101 = vrot.lane.b32.xlu1 %v1654_v2, %s1819_s0  ;;  %1103 = vrot.lane.b32.xlu0 %v1655_v3, %s1819_s0  ;;  %v1660_v24 = vcombine.low %v1064_v8, %v1064_v8  ;;  %v1661_v59 = vcombine.high %v1064_v8, %v1064_v8  ;;  %v1648_v4 = vcombine.low %v1045_v20, %v1045_v20 }
 0x274   :  { %v2457_v7 = vcombine.high %v1045_v20, %v1045_v20 }
 0x277   :  { %1097 = vrot.lane.b32.xlu1 %v1652_v10, %s1819_s0  ;;  %1163 = vrot.lane.b32.xlu0 %v1653_v48, %s1822_s13  ;;  %v1027_v25 = vld [vmem:[#allocation3 + $0x10] sm:$0xff] }
 0x278   :  { %v1656_v16 = vcombine.low %v1027_v25, %v1027_v25  ;;  %v1657_v56 = vcombine.high %v1027_v25, %v1027_v25  ;;  %v1065_v34 = vmul.bf16 %v1027_v25, %v1983_v61  ;;  %v1046_v29 = vmul.bf16 %v1027_v25, %v2715_v57  ;;  %v2501_v61 = vpop.permute.xlu1 %1190 }
 0x27a   :  { %v1662_v28 = vcombine.low %v1065_v34, %v1065_v34  ;;  %v1663_v33 = vcombine.high %v1065_v34, %v1065_v34  ;;  %v2483_v32 = vcombine.low %v1046_v29, %v1046_v29  ;;  %v2485_v60 = vcombine.high %v1046_v29, %v1046_v29 }
 0x27b   :  { %1165 = vrot.lane.b32.xlu1 %v1654_v2, %s1822_s13  ;;  %1167 = vrot.lane.b32.xlu0 %v1655_v3, %s1822_s13 }
 0x27c   :  { %v2505_v36 = vpop.permute.xlu1 %1230 }
 0x27f   :  { %1220 = vrot.lane.b32.xlu1 %v1653_v48, %s1825_s16  ;;  %1222 = vrot.lane.b32.xlu0 %v1654_v2, %s1825_s16 }
 0x283   :  { %1224 = vrot.lane.b32.xlu1 %v1655_v3, %s1825_s16  ;;  %1131 = vrot.lane.b32.xlu0 %v1659_v15, %s1820_s5 }
 0x287   :  { %1133 = vrot.lane.b32.xlu1 %v1660_v24, %s1820_s5  ;;  %1135 = vrot.lane.b32.xlu0 %v1661_v59, %s1820_s5 }
 0x28b   :  { %1148 = vrot.lane.b32.xlu1 %v1647_v58, %s1821_s6  ;;  %1150 = vrot.lane.b32.xlu0 %v1648_v4, %s1821_s6 }
 0x28f   :  { %1152 = vrot.lane.b32.xlu1 %v2457_v7, %s1821_s6  ;;  %1129 = vrot.lane.b32.xlu0 %v1658_v37, %s1820_s5 }
 0x293   :  { %1146 = vrot.lane.b32.xlu1 %v1646_v17, %s1821_s6  ;;  %1182 = vrot.lane.b32.xlu0 %v1660_v24, %s1823_s14 }
 0x297   :  { %1180 = vrot.lane.b32.xlu1 %v1659_v15, %s1823_s14  ;;  %1200 = vrot.lane.b32.xlu0 %v1647_v58, %s1824_s15 }
 0x29b   :  { %1184 = vrot.lane.b32.xlu1 %v1661_v59, %s1823_s14  ;;  %1204 = vrot.lane.b32.xlu0 %v2457_v7, %s1824_s15 }
 0x29f   :  { %1202 = vrot.lane.b32.xlu1 %v1648_v4, %s1824_s15  ;;  %1237 = vrot.lane.b32.xlu0 %v1659_v15, %s1826_s17 }
 0x2a3   :  { %1239 = vrot.lane.b32.xlu1 %v1660_v24, %s1826_s17  ;;  %1241 = vrot.lane.b32.xlu0 %v1661_v59, %s1826_s17 }
 0x2a7   :  { %1105 = vrot.lane.b32.xlu1 %v1656_v16, %s1819_s0  ;;  %1107 = vrot.lane.b32.xlu0 %v1657_v56, %s1819_s0 }
 0x2ab   :  { %1169 = vrot.lane.b32.xlu1 %v1656_v16, %s1822_s13  ;;  %1171 = vrot.lane.b32.xlu0 %v1657_v56, %s1822_s13 }
 0x2af   :  { %1228 = vrot.lane.b32.xlu1 %v1657_v56, %s1825_s16  ;;  %1226 = vrot.lane.b32.xlu0 %v1656_v16, %s1825_s16 }
 0x2b3   :  { %1137 = vrot.lane.b32.xlu1 %v1662_v28, %s1820_s5  ;;  %1139 = vrot.lane.b32.xlu0 %v1663_v33, %s1820_s5 }
 0x2b7   :  { %1154 = vrot.lane.b32.xlu1 %v2483_v32, %s1821_s6  ;;  %1156 = vrot.lane.b32.xlu0 %v2485_v60, %s1821_s6 }
 0x2bb   :  { %1186 = vrot.lane.b32.xlu1 %v1662_v28, %s1823_s14  ;;  %1188 = vrot.lane.b32.xlu0 %v1663_v33, %s1823_s14 }
 0x2bf   :  { %1208 = vrot.lane.b32.xlu1 %v2485_v60, %s1824_s15  ;;  %1206 = vrot.lane.b32.xlu0 %v2483_v32, %s1824_s15 }
 0x2c3   :  { %1245 = vrot.lane.b32.xlu1 %v1663_v33, %s1826_s17  ;;  %1247 = vrot.lane.b32.xlu0 %v2424_v43, %s1826_s17 }
 0x2c7   :  { %1243 = vrot.lane.b32.xlu0 %v1662_v28, %s1826_s17 }
 0x2e1   :  { %v1100_v49 = vpop.permute.xlu0 %1099 }
 0x2e5   :  { %v1102_v14 = vpop.permute.xlu1 %1101  ;;  %v2507_v31 = vpop.permute.xlu0 %1103 }
 0x2e6   :  { %v1110_v40 = vsel %vm428_vm2, %v1100_v49, %v1102_v14  ;;  %v1111_v26 = vsel %vm428_vm2, %v1102_v14, %v2507_v31 }
 0x2e7   :  { %v1259_v30 = vsel %vm675_vm4, %v1647_v58, %v1110_v40  ;;  %v1262_v43 = vsel %vm675_vm4, %v1648_v4, %v1111_v26 }
 0x2e8   :  { %1359 = vrot.lane.b32.xlu1 %v1259_v30, %s1827_s18  ;;  %1361 = vrot.lane.b32.xlu0 %v1262_v43, %s1827_s18 }
 0x2e9   :  { %v1098_v45 = vpop.permute.xlu1 %1097  ;;  %v1164_v50 = vpop.permute.xlu0 %1163 }
 0x2ea   :  { %v1109_v27 = vsel %vm428_vm2, %v1098_v45, %v1100_v49 }
 0x2eb   :  { %v1256_v23 = vsel %vm675_vm4, %v1646_v17, %v1109_v27 }
 0x2ec   :  { %1357 = vrot.lane.b32.xlu1 %v1256_v23, %s1827_s18 }
 0x2ed   :  { %v1166_v46 = vpop.permute.xlu1 %1165  ;;  %v2519_v41 = vpop.permute.xlu0 %1167 }
 0x2ee   :  { %v1173_v34 = vsel %vm536_vm6, %v1164_v50, %v1166_v46  ;;  %v1174_v28 = vsel %vm536_vm6, %v1166_v46, %v2519_v41 }
 0x2f1   :  { %v1221_v39 = vpop.permute.xlu1 %1220  ;;  %v1223_v18 = vpop.permute.xlu0 %1222 }
 0x2f2   :  { %v1232_v30 = vsel %vm622_vm10, %v1221_v39, %v1223_v18 }
 0x2f5   :  { %v2521_v42 = vpop.permute.xlu1 %1224  ;;  %v1132_v47 = vpop.permute.xlu0 %1131 }
 0x2f6   :  { %v1233_v26 = vsel %vm622_vm10, %v1223_v18, %v2521_v42 }
 0x2f9   :  { %v1134_v22 = vpop.permute.xlu1 %1133  ;;  %v2523_v35 = vpop.permute.xlu0 %1135 }
 0x2fa   :  { %v1142_v10 = vsel %vm473_vm0, %v1132_v47, %v1134_v22  ;;  %v1143_v20 = vsel %vm473_vm0, %v1134_v22, %v2523_v35 }
 0x2fd   :  { %v1149_v19 = vpop.permute.xlu1 %1148  ;;  %v1151_v62 = vpop.permute.xlu0 %1150 }
 0x2fe   :  { %v1159_v3 = vsel %vm510_vm5, %v1149_v19, %v1151_v62 }
 0x2ff   :  { %v1277_v59 = vsel %vm675_vm4, %v1142_v10, %v1159_v3 }
 0x301   :  { %v2525_v63 = vpop.permute.xlu1 %1152  ;;  %v1130_v0 = vpop.permute.xlu0 %1129 }
 0x302   :  { %v1160_v24 = vsel %vm510_vm5, %v1151_v62, %v2525_v63  ;;  %v1141_v58 = vsel %vm473_vm0, %v1130_v0, %v1132_v47 }
 0x303   :  { %v1280_v17 = vsel %vm675_vm4, %v1143_v20, %v1160_v24 }
 0x305   :  { %v1147_v21 = vpop.permute.xlu1 %1146  ;;  %v1183_v51 = vpop.permute.xlu0 %1182 }
 0x306   :  { %v1158_v52 = vsel %vm510_vm5, %v1147_v21, %v1149_v19 }
 0x307   :  { %v1274_v16 = vsel %vm675_vm4, %v1141_v58, %v1158_v52 }
 0x309   :  { %v1181_v5 = vpop.permute.xlu1 %1180  ;;  %v1201_v6 = vpop.permute.xlu0 %1200 }
 0x30a   :  { %v1310_v9 = vsel %vm675_vm4, %v1201_v6, %v1221_v39  ;;  %v1292_v48 = vsel %vm675_vm4, %v1164_v50, %v1181_v5  ;;  %v1192_v25 = vsel %vm572_vm8, %v1181_v5, %v1183_v51 }
 0x30b   :  { %1393 = vrot.lane.b32.xlu0 %v1310_v9, %s1827_s18  ;;  %v1295_v29 = vsel %vm675_vm4, %v1173_v34, %v1192_v25 }
 0x30d   :  { %v2529_v54 = vpop.permute.xlu1 %1184  ;;  %v2531_v55 = vpop.permute.xlu0 %1204 }
 0x30e   :  { %v1193_v56 = vsel %vm572_vm8, %v1183_v51, %v2529_v54 }
 0x30f   :  { %v1298_v14 = vsel %vm675_vm4, %v1174_v28, %v1193_v56 }
 0x311   :  { %v1203_v38 = vpop.permute.xlu1 %1202  ;;  %v1238_v13 = vpop.permute.xlu0 %1237 }
 0x312   :  { %1405 = vrot.lane.b32.xlu1 %v1238_v13, %s1827_s18  ;;  %v1213_v49 = vsel %vm601_vm9, %v1203_v38, %v2531_v55  ;;  %v1212_v40 = vsel %vm601_vm9, %v1201_v6, %v1203_v38 }
 0x313   :  { %v1316_v50 = vsel %vm675_vm4, %v1213_v49, %v1233_v26  ;;  %v1313_v23 = vsel %vm675_vm4, %v1212_v40, %v1232_v30 }
 0x315   :  { %v1240_v53 = vpop.permute.xlu1 %1239  ;;  %v2535_v44 = vpop.permute.xlu0 %1241 }
 0x316   :  { %v1249_v2 = vsel %vm650_vm1, %v1238_v13, %v1240_v53  ;;  %1381 = vrot.lane.b32.xlu1 %v1292_v48, %s1827_s18  ;;  %v1250_v1 = vsel %vm650_vm1, %v1240_v53, %v2535_v44 }
 0x317   :  { %1407 = vrot.lane.b32.xlu0 %v1249_v2, %s1827_s18 }
 0x319   :  { %v1106_v15 = vpop.permute.xlu1 %1105  ;;  %v1108_v8 = vpop.permute.xlu0 %1107 }
 0x31a   :  { %1409 = vrot.lane.b32.xlu1 %v1250_v1, %s1827_s18  ;;  %v1113_v27 = vsel %vm428_vm2, %v1106_v15, %v1108_v8  ;;  %v1271_v22 = vsel %vm675_vm4, %v2485_v60, %v1108_v8  ;;  %v1112_v18 = vsel %vm428_vm2, %v2507_v31, %v1106_v15 }
 0x31b   :  { %1371 = vrot.lane.b32.xlu0 %v1277_v59, %s1827_s18  ;;  %v1268_v47 = vsel %vm675_vm4, %v2483_v32, %v1113_v27  ;;  %v1265_v32 = vsel %vm675_vm4, %v2457_v7, %v1112_v18 }
 0x31d   :  { %v1170_v4 = vpop.permute.xlu1 %1169  ;;  %v2553_v37 = vpop.permute.xlu0 %1171 }
 0x31e   :  { %1373 = vrot.lane.b32.xlu1 %v1280_v17, %s1827_s18  ;;  %v1175_v38 = vsel %vm536_vm6, %v2519_v41, %v1170_v4 }
 0x31f   :  { %1369 = vrot.lane.b32.xlu0 %v1274_v16, %s1827_s18 }
 0x321   :  { %v1229_v33 = vpop.permute.xlu1 %1228  ;;  %v1227_v57 = vpop.permute.xlu0 %1226 }
 0x322   :  { %1383 = vrot.lane.b32.xlu1 %v1295_v29, %s1827_s18  ;;  %v1234_v3 = vsel %vm622_vm10, %v2521_v42, %v1227_v57  ;;  %v1235_v42 = vsel %vm622_vm10, %v1227_v57, %v1229_v33 }
 0x323   :  { %1385 = vrot.lane.b32.xlu0 %v1298_v14, %s1827_s18 }
 0x325   :  { %v1138_v43 = vpop.permute.xlu1 %1137  ;;  %v1140_v45 = vpop.permute.xlu0 %1139 }
 0x326   :  { %1397 = vrot.lane.b32.xlu1 %v1316_v50, %s1827_s18  ;;  %v1144_v31 = vsel %vm473_vm0, %v2523_v35, %v1138_v43  ;;  %v1145_v51 = vsel %vm473_vm0, %v1138_v43, %v1140_v45  ;;  %v1176_v35 = vsel %vm536_vm6, %v1170_v4, %v2553_v37 }
 0x327   :  { %1395 = vrot.lane.b32.xlu0 %v1313_v23, %s1827_s18 }
 0x329   :  { %v1157_v46 = vpop.permute.xlu0 %1156  ;;  %v1155_v39 = vpop.permute.xlu1 %1154 }
 0x32a   :  { %1365 = vrot.lane.b32.xlu1 %v1268_v47, %s1827_s18  ;;  %v1289_v19 = vsel %vm675_vm4, %v1140_v45, %v1157_v46  ;;  %v1161_v0 = vsel %vm510_vm5, %v2525_v63, %v1155_v39  ;;  %v1162_v60 = vsel %vm510_vm5, %v1155_v39, %v1157_v46 }
 0x32b   :  { %1367 = vrot.lane.b32.xlu0 %v1271_v22, %s1827_s18  ;;  %v1283_v5 = vsel %vm675_vm4, %v1144_v31, %v1161_v0  ;;  %v1286_v9 = vsel %vm675_vm4, %v1145_v51, %v1162_v60  ;;  %v1326_v0 = vld [vmem:[#allocation7] sm:$0xf] }
 0x32d   :  { %v1189_v62 = vpop.permute.xlu0 %1188  ;;  %v1187_v21 = vpop.permute.xlu1 %1186 }
 0x32e   :  { %1379 = vrot.lane.b32.xlu1 %v1289_v19, %s1827_s18  ;;  %v1195_v6 = vsel %vm572_vm8, %v1187_v21, %v1189_v62  ;;  %v1194_v7 = vsel %vm572_vm8, %v2529_v54, %v1187_v21  ;;  %v1196_v54 = vsel %vm572_vm8, %v1189_v62, %v2501_v61  ;;  %v1236_v61 = vsel %vm622_vm10, %v1229_v33, %v2505_v36  ;;  %v1327_v36 = vld [vmem:[%s2705_s4] sm:$0xff]  ;;  %s1830_s4 = smov [#allocation9]  }
 0x32f   :  { %1363 = vrot.lane.b32.xlu0 %v1265_v32, %s1827_s18  ;;  %v1304_v13 = vsel %vm675_vm4, %v1176_v35, %v1195_v6  ;;  %v1301_v53 = vsel %vm675_vm4, %v1175_v38, %v1194_v7  ;;  %s1616_s23 = sshll.u32 %s1830_s4, 4  ;;  %s1617_s23 = int_to_ptr.vmem [resolvable:$true] %s1616_s23 }
 0x330   :  { %s1786_s24 = scalar_lea.vmem %s1617_s23, 512  ;;  %p1791_p3 = scmp.lt.s32.totalorder %s1617_s23, %s1617_s23 }
 0x331   :  { %v1207_v63 = vpop.permute.xlu0 %1206  ;;  %v1209_v2 = vpop.permute.xlu1 %1208  ;;  %p1787_p2 = scmp.ne.s32.totalorder %s1617_s23, %s1786_s24  ;;  %p1792_p4 = scmp.lt.s32.totalorder %s1786_s24, %s1786_s24 }
 0x332   :  { %1375 = vrot.lane.b32.xlu1 %v1283_v5, %s1827_s18  ;;  %v1214_v48 = vsel %vm601_vm9, %v2531_v55, %v1207_v63  ;;  %v1216_v1 = vsel %vm601_vm9, %v1209_v2, %v2503_v11  ;;  %v1307_v55 = vsel %vm675_vm4, %v2553_v37, %v1196_v54  ;;  %v1215_v15 = vsel %vm601_vm9, %v1207_v63, %v1209_v2 }
 0x333   :  { %1377 = vrot.lane.b32.xlu0 %v1286_v9, %s1827_s18  ;;  %v1319_v41 = vsel %vm675_vm4, %v1214_v48, %v1234_v3  ;;  %v1325_v8 = vsel %vm675_vm4, %v1216_v1, %v1236_v61  ;;  %v1322_v59 = vsel %vm675_vm4, %v1215_v15, %v1235_v42  ;;  %p1793_p5 = por %p1792_p4, %p1791_p3 }
 0x335   :  { %v1248_v10 = vpop.permute.xlu0 %1247  ;;  %v1246_v11 = vpop.permute.xlu1 %1245  ;;  %p1794_p6 = pnand %p1793_p5, %p1787_p2 }
 0x336   :  { %1389 = vrot.lane.b32.xlu1 %v1304_v13, %s1827_s18  ;;  %v1253_v58 = vsel %vm650_vm1, %v1246_v11, %v1248_v10 }
 0x337   :  { %1387 = vrot.lane.b32.xlu0 %v1301_v53, %s1827_s18 }
 0x339   :  { %v1244_v24 = vpop.permute.xlu0 %1243 }
 0x33a   :  { %1399 = vrot.lane.b32.xlu1 %v1319_v41, %s1827_s18  ;;  %v1252_v52 = vsel %vm650_vm1, %v1244_v24, %v1246_v11  ;;  %v1251_v20 = vsel %vm650_vm1, %v2535_v44, %v1244_v24 }
 0x33b   :  { %1391 = vrot.lane.b32.xlu0 %v1307_v55, %s1827_s18 }
 0x33e   :  { %1403 = vrot.lane.b32.xlu1 %v1325_v8, %s1827_s18 }
 0x33f   :  { %1401 = vrot.lane.b32.xlu0 %v1322_v59, %s1827_s18 }
 0x342   :  { %1413 = vrot.lane.b32.xlu1 %v1252_v52, %s1827_s18 }
 0x343   :  { %1411 = vrot.lane.b32.xlu0 %v1251_v20, %s1827_s18 }
 0x346   :  { %1330 = vperm.xlu1 %1728, %v1327_v36  }
 0x347   :  { %1415 = vrot.lane.b32.xlu0 %v1253_v58, %s1827_s18 }
 0x35a   :  { %v1360_v4 = vpop.permute.xlu1 %1359  ;;  %v1362_v37 = vpop.permute.xlu0 %1361 }
 0x35b   :  { %v1418_v17 = vsel %vm798_vm11, %v1360_v4, %v1362_v37 }
 0x35c   :  { %1481 = vmatprep.subr.bf16.mxu1 %v1418_v17 }
 0x35e   :  { %v1358_v25 = vpop.permute.xlu1 %1357 }
 0x35f   :  { %v1417_v44 = vsel %vm798_vm11, %v1358_v25, %v1360_v4 }
 0x360   :  { %1482 = vmatpush1.bf16.msra.mxu1 %v1417_v44 }
 0x37d   :  { %v1394_v56 = vpop.permute.xlu0 %1393 }
 0x384   :  { %v1406_v16 = vpop.permute.xlu1 %1405 }
 0x388   :  { %v1382_v34 = vpop.permute.xlu1 %1381 }
 0x389   :  { %v1408_v28 = vpop.permute.xlu0 %1407 }
 0x38a   :  { %v1437_v47 = vsel %vm798_vm11, %v1406_v16, %v1408_v28 }
 0x38b   :  { %v1467_v19 = vsel %vm675_vm4, %v1437_v47, 0 }
 0x38c   :  { %v2647_v33 = vpop.permute.xlu1 %1409 }
 0x38d   :  { %v1372_v57 = vpop.permute.xlu0 %1371  ;;  %v1438_v22 = vsel %vm798_vm11, %v1408_v28, %v2647_v33 }
 0x390   :  { %v1374_v29 = vpop.permute.xlu1 %1373 }
 0x391   :  { %v1370_v49 = vpop.permute.xlu0 %1369  ;;  %v1423_v14 = vsel %vm798_vm11, %v1372_v57, %v1374_v29 }
 0x392   :  { %v1422_v40 = vsel %vm798_vm11, %v1370_v49, %v1372_v57  ;;  %1483 = vmatprep.subr.bf16.mxu1 %v1423_v14 }
 0x393   :  { %1484 = vmatpush1.bf16.msra.mxu1 %v1422_v40 }
 0x394   :  { %v1384_v26 = vpop.permute.xlu1 %1383 }
 0x395   :  { %v1386_v30 = vpop.permute.xlu0 %1385  ;;  %v1427_v43 = vsel %vm798_vm11, %v1382_v34, %v1384_v26 }
 0x396   :  { %v1428_v45 = vsel %vm798_vm11, %v1384_v26, %v1386_v30 }
 0x397   :  { %1485 = vmatprep.subr.bf16.mxu1 %v1428_v45 }
 0x398   :  { %1486 = vmatpush1.bf16.msra.mxu1 %v1427_v43  ;;  %v1398_v50 = vpop.permute.xlu1 %1397 }
 0x399   :  { %v1396_v27 = vpop.permute.xlu0 %1395 }
 0x39a   :  { %v1433_v23 = vsel %vm798_vm11, %v1396_v27, %v1398_v50  ;;  %v1432_v46 = vsel %vm798_vm11, %v1394_v56, %v1396_v27 }
 0x39b   :  { %1487 = vmatprep.subr.bf16.mxu1 %v1433_v23 }
 0x39c   :  { %1488 = vmatpush1.bf16.msra.mxu1 %v1432_v46  ;;  %v1366_v39 = vpop.permute.xlu1 %1365 }
 0x39d   :  { %v1368_v18 = vpop.permute.xlu0 %1367  ;;  %1667 = vmatprep.subr.msk.bf16.mxu1 %vm675_vm4, %v1438_v22 }
 0x39e   :  { %v1421_v21 = vsel %vm798_vm11, %v1366_v39, %v1368_v18 }
 0x3a0   :  { %1490 = vmatpush1.bf16.msra.mxu1 %v1467_v19  ;;  %v1380_v62 = vpop.permute.xlu1 %1379 }
 0x3a1   :  { %v1364_v32 = vpop.permute.xlu0 %1363  ;;  %1695 = vmatprep.subr.bf16.mxu1 %v1828_v12 }
 0x3a2   :  { %v1419_v60 = vsel %vm798_vm11, %v1362_v37, %v1364_v32  ;;  %v1420_v31 = vsel %vm798_vm11, %v1364_v32, %v1366_v39 }
 0x3a3   :  { %1522 = vmatprep.subr.bf16.mxu0 %v1420_v31  ;;  %1668 = vmatmul.mubr.msk.bf16.vlgmr.msra.gmra.mrb[4].mxu1 %vm1462_vm14, %v1326_v0 }
 0x3a4   :  { %1523 = vmatpush1.bf16.msra.mxu0 %v1419_v60  ;;  %1696 = vmatpush3.bf16.msra.mxu1 %v1421_v21  ;;  %v1376_v51 = vpop.permute.xlu1 %1375 }
 0x3a5   :  { %v1378_v5 = vpop.permute.xlu0 %1377  ;;  %v1424_v6 = vsel %vm798_vm11, %v1374_v29, %v1376_v51  ;;  %1697 = vmatprep.subr.bf16.mxu1 %v1828_v12  ;;  %1705 = vmatprep.mubr.msk.bf16.mxu1 %vm1829_vm13, %v1828_v12 }
 0x3a6   :  { %v1425_v63 = vsel %vm798_vm11, %v1376_v51, %v1378_v5  ;;  %v1426_v9 = vsel %vm798_vm11, %v1378_v5, %v1380_v62 }
 0x3a7   :  { %1524 = vmatprep.subr.bf16.mxu0 %v1425_v63 }
 0x3a8   :  { %1525 = vmatpush1.bf16.msra.mxu0 %v1424_v6  ;;  %1698 = vmatpush3.bf16.msra.mxu1 %v1426_v9  ;;  %v1390_v7 = vpop.permute.xlu1 %1389 }
 0x3a9   :  { %v1388_v35 = vpop.permute.xlu0 %1387  ;;  %1699 = vmatprep.subr.bf16.mxu1 %v1828_v12 }
 0x3aa   :  { %v1430_v38 = vsel %vm798_vm11, %v1388_v35, %v1390_v7  ;;  %v1429_v13 = vsel %vm798_vm11, %v1386_v30, %v1388_v35 }
 0x3ab   :  { %1526 = vmatprep.subr.bf16.mxu0 %v1430_v38 }
 0x3ac   :  { %1527 = vmatpush1.bf16.msra.mxu0 %v1429_v13  ;;  %v1400_v48 = vpop.permute.xlu1 %1399 }
 0x3ad   :  { %v1392_v53 = vpop.permute.xlu0 %1391  ;;  %v1434_v1 = vsel %vm798_vm11, %v1398_v50, %v1400_v48 }
 0x3ae   :  { %v1431_v54 = vsel %vm798_vm11, %v1390_v7, %v1392_v53 }
 0x3af   :  { %1700 = vmatpush3.bf16.msra.mxu1 %v1431_v54 }
 0x3b0   :  { %v1404_v2 = vpop.permute.xlu1 %1403  ;;  %1701 = vmatprep.subr.bf16.mxu1 %v1828_v12 }
 0x3b1   :  { %v1402_v3 = vpop.permute.xlu0 %1401 }
 0x3b2   :  { %v1436_v10 = vsel %vm798_vm11, %v1402_v3, %v1404_v2  ;;  %v1435_v41 = vsel %vm798_vm11, %v1400_v48, %v1402_v3 }
 0x3b3   :  { %1528 = vmatprep.subr.bf16.mxu0 %v1435_v41  ;;  %1702 = vmatpush3.bf16.msra.mxu1 %v1436_v10 }
 0x3b4   :  { %1529 = vmatpush1.bf16.msra.mxu0 %v1434_v1  ;;  %v1414_v55 = vpop.permute.xlu1 %1413  ;;  %1703 = vmatprep.subr.bf16.mxu1 %v1828_v12 }
 0x3b5   :  { %v1412_v15 = vpop.permute.xlu0 %1411 }
 0x3b6   :  { %v1439_v61 = vsel %vm798_vm11, %v2647_v33, %v1412_v15  ;;  %v1440_v42 = vsel %vm798_vm11, %v1412_v15, %v1414_v55 }
 0x3b7   :  { %v1473_v8 = vsel %vm675_vm4, %v1439_v61, 0  ;;  %1669 = vmatprep.subr.msk.bf16.mxu0 %vm675_vm4, %v1440_v42 }
 0x3b8   :  { %1531 = vmatpush1.bf16.msra.mxu0 %v1473_v8 }
 0x3b9   :  { %v1416_v24 = vpop.permute.xlu0 %1415 }
 0x3ba   :  { %v1441_v59 = vsel %vm798_vm11, %v1414_v55, %v1416_v24 }
 0x3bb   :  { %v1479_v11 = vsel %vm675_vm4, %v1441_v59, 0  ;;  %1670 = vmatmul.mubr.msk.bf16.vlgmr.msra.gmra.mrb[8].mxu0 %vm1462_vm14, %v1326_v0 }
 0x3bc   :  { %1704 = vmatpush3.bf16.msra.mxu1 %v1479_v11 }
 0x3bf   :  { %1706 = vmatmul.mubr.msk.bf16.vlgmr.msra.gmra.mrb[8].mxu1 %vm1462_vm14, %v1326_v0 }
 0x3c5   :  { %v1331_v12 = vpop.permute.xlu1 %1330 }
 0x476   :  { %v1515_v52 = vpop.f32.mrb[4].mxu1 }
 0x477   :  { %v1516_v20 = vadd.f32 %v1515_v52, %v1331_v12  ;;  %v1517_v36 = vpop.f32.mrb[5].mxu1 }
 0x478   :  { %v1518_v58 = vadd.f32 %v1517_v36, %v1331_v12  ;;  %v1519_v4 = vpop.f32.mrb[6].mxu1 }
 0x479   :  { %v1602_v37 = vmax.f32 %v1516_v20, 0.0  ;;  %v1520_v17 = vpop.f32.mrb[7].mxu1 }
 0x47a   :  { %v1603_v25 = vmax.f32 %v1518_v58, 0.0 }
 0x47b   :  { %1606 = vst [vmem:[#allocation9] sm:$0xff] %v1602_v37 }
 0x47c   :  { %1607 = vst [vmem:[#allocation9 + $0x8] sm:$0xff] %v1603_v25 }
 0x48e   :  { %v1556_v44 = vpop.f32.mrb[8].mxu0 }
 0x48f   :  { %v1557_v16 = vpop.f32.mrb[9].mxu0 }
 0x490   :  { %v1558_v56 = vadd.f32 %v1557_v16, %v1331_v12  ;;  %v1559_v34 = vpop.f32.mrb[10].mxu0 }
 0x491   :  { %v1560_v28 = vpop.f32.mrb[11].mxu0 }
 0x492   :  { %v1604_v33 = vmax.f32 %v1558_v56, 0.0  ;;  %v1596_v57 = vpop.f32.mrb[8].mxu1 }
 0x493   :  { %v1597_v29 = vadd.f32 %v1596_v57, %v1331_v12  ;;  %v1707_v49 = vpop.f32.mrb[9].mxu1 }
 0x494   :  { %1609 = vst [vmem:[#allocation9 + $0x10] sm:$0xff] %v1604_v33  ;;  %v1599_v14 = vpop.f32.mrb[10].mxu1 }
 0x495   :  { %v1605_v40 = vmax.f32 %v1597_v29, 0.0  ;;  %v1708_v26 = vpop.f32.mrb[11].mxu1 }
 0x497   :  { %1610 = vst [vmem:[#allocation9 + $0x18] sm:$0xff] %v1605_v40 }
 0x498   :  { %1797 = shalt.err (!%p1794_p6)
}
 0x499   :  { %s1798_s1 = scalar_lea.hbm %s2709_s8, 512 }
 0x49a   :  { %p1799_p7 = scmp.ne.s32.totalorder %s2709_s8, %s1798_s1  ;;  %p1802_p8 = scmp.lt.u32.totalorder %s1798_s1, %s2709_s8 }
 0x49c   :  { %p1804_p9 = pnand %p1802_p8, %p1799_p7 }
 0x49e   :  { %1807 = shalt.err (!%p1804_p9)
}
 0x49f   :  { %s1831_s30 = smov 256   ;;  %s1832_s9 = smov 16  }
 0x4a0   :  { %1622 = dma.vmem_to_hbm [thread:$0]  %s1617_s23, 512, %s2709_s8, [#allocation6], %s1831_s30, %s1831_s30, %s1832_s9  }
 0x4a1   :  { %1812 = dma.done.wait [#allocation6], 512  }
 0x4a2   :  { %1813 = vsyncadd [#allocation6], 4294966784 }
 0x4a3   :  { %1626 = vsyncpa [#allocation5], 1 }
 0x4a4   :  { %1627 = vsyncpa [#allocation8], 1 }
 0x4a5   :  { %1628 = vsyncpa [#allocation6], 1 }

</bundles_post_ra>
